<compile_context>
chip_gen: v7x
topology: tpu7x:2x2x1
jax: 0.10.0
libtpu: 0.0.40
codegen_flags: <defaults>
</compile_context>

<pallas_src>
import functools

import numpy as np
import jax
import jax.numpy as jnp
from jax import lax
from jax.experimental import pallas as pl
from jax.experimental.pallas import tpu as pltpu


# ---------------------------------------------------------------------------
# Fused kernel: conv1 + bn1 + relu + conv2 + bn2 + residual add + relu
# ---------------------------------------------------------------------------
def _basic_block_kernel(x_ref, w1_ref, w2_ref, b1_ref, b2_ref, row_ref, col_ref,
                        o_ref, *, img_h, img_w):
    H, W = img_h, img_w
    L = x_ref.shape[-1]                                   # batch_tile * H * W

    x = x_ref[...].astype(jnp.float32)                    # (C, L) residual + conv1 input
    row = row_ref[...]                                    # (1, L) int32, within-image row
    col = col_ref[...]                                    # (1, L) int32, within-image col

    # 9 taps: (lane shift, boolean halo mask or None).  Masks are cheap VPU
    # compares, built once per grid step and reused by both convs; they also
    # zero any contribution rolled in from a neighbouring image in the tile.
    taps = []
    for dy in (-1, 0, 1):
        if dy == -1:
            r_ok = row >= 1
        elif dy == 1:
            r_ok = row < (H - 1)
        else:
            r_ok = None
        for dx in (-1, 0, 1):
            if dx == -1:
                c_ok = col >= 1
            elif dx == 1:
                c_ok = col < (W - 1)
            else:
                c_ok = None
            if r_ok is None and c_ok is None:
                m = None                                  # centre tap: always valid
            elif r_ok is None:
                m = c_ok
            elif c_ok is None:
                m = r_ok
            else:
                m = r_ok & c_ok
            off = dy * W + dx
            taps.append(((-off) % L, m))

    def conv3x3_bn(a_f32, w_ref, b_ref):
        # a_f32: (Cin, L) f32  ->  (Cout, L) f32  (BN scale pre-folded into w)
        parts = []
        for shift, m in taps:
            t = a_f32 if shift == 0 else pltpu.roll(a_f32, shift=shift, axis=1)
            if m is not None:
                t = jnp.where(m, t, 0.0)
            parts.append(t.astype(jnp.bfloat16))          # patch built in bf16
        patch = jnp.concatenate(parts, axis=0)            # (9*Cin, L) bf16
        y = jnp.dot(w_ref[...], patch, preferred_element_type=jnp.float32)
        return y + b_ref[...]                             # folded BN bias (f32)

    h = jnp.maximum(conv3x3_bn(x, w1_ref, b1_ref), 0.0)   # conv1 + bn1 + relu
    y = conv3x3_bn(h, w2_ref, b2_ref) + x                 # conv2 + bn2 + residual
    o_ref[...] = jnp.maximum(y, 0.0).astype(o_ref.dtype)  # relu


# ---------------------------------------------------------------------------
# Wrapper
# ---------------------------------------------------------------------------
def _fold_bn(gamma, beta, mean, var, eps=1e-5):
    scale = gamma / jnp.sqrt(var + eps)
    return scale, beta - mean * scale


def _pick_batch_tile(n, c, hw, *, max_lanes=4096, vmem_budget=24 * 1024 * 1024):
    """Largest batch tile whose lane extent stays 128-aligned and in budget."""
    best = None
    for b in range(1, n + 1):
        if n % b:
            continue
        lanes = b * hw
        if b != n and lanes % 128 != 0:       # keep blocks lane-dense
            continue
        # rough per-step VMEM: double-buffered f32 in/out + bf16 patch + f32 temps
        est = lanes * c * (4 * 4 + 9 * 2 * 2 + 4 * 4)
        if lanes <= max_lanes and est <= vmem_budget:
            best = b
    if best is None:
        best = n if hw % 128 else 1
    return best


def basic_block_forward(x_nchw, params):
    """BasicBlock forward (stride=1, downsample=None). Input/output are NCHW."""
    N, C, H, W = x_nchw.shape
    HW = H * W
    assert params["w1"].shape[-1] == C, "identity residual needs inplanes==planes"

    s1, b1 = _fold_bn(params["bn1_gamma"], params["bn1_beta"],
                      params["bn1_mean"], params["bn1_var"])
    s2, b2 = _fold_bn(params["bn2_gamma"], params["bn2_beta"],
                      params["bn2_mean"], params["bn2_var"])

    # HWIO (3,3,Cin,Cout) -> (Cout, 9*Cin), tap-major / cin-minor to match the
    # in-kernel patch order.  BN scale folded in (f32) before the bf16 cast.
    def wmat(w_hwio, scale):
        co = w_hwio.shape[-1]
        m = jnp.transpose(w_hwio, (3, 0, 1, 2)).reshape(co, -1).astype(jnp.float32)
        return (m * scale[:, None]).astype(jnp.bfloat16)

    w1 = wmat(params["w1"], s1)
    w2 = wmat(params["w2"], s2)
    b1 = b1.reshape(C, 1).astype(jnp.float32)
    b2 = b2.reshape(C, 1).astype(jnp.float32)

    # Layout plumbing: fold batch into the lane axis -> (C, N*H*W).
    x_cl = jnp.transpose(x_nchw, (1, 0, 2, 3)).reshape(C, N * HW)

    bt = _pick_batch_tile(N, C, HW)
    lanes = bt * HW

    # Host-precomputed within-image coordinates (no per-step div/mod in-kernel).
    p = np.arange(lanes, dtype=np.int32)
    row = jnp.asarray(((p % HW) // W).reshape(1, lanes))
    col = jnp.asarray((p % W).reshape(1, lanes))

    out_cl = pl.pallas_call(
        functools.partial(_basic_block_kernel, img_h=H, img_w=W),
        out_shape=jax.ShapeDtypeStruct((C, N * HW), x_nchw.dtype),
        grid_spec=pltpu.PrefetchScalarGridSpec(
            num_scalar_prefetch=0,
            grid=(N // bt,),
            in_specs=[
                pl.BlockSpec((C, lanes), lambda n: (0, n)),        # x
                pl.BlockSpec((C, 9 * C), lambda n: (0, 0)),        # w1 (bf16, BN-scaled)
                pl.BlockSpec((C, 9 * C), lambda n: (0, 0)),        # w2 (bf16, BN-scaled)
                pl.BlockSpec((C, 1), lambda n: (0, 0)),            # bias1
                pl.BlockSpec((C, 1), lambda n: (0, 0)),            # bias2
                pl.BlockSpec((1, lanes), lambda n: (0, 0)),        # row idx (resident)
                pl.BlockSpec((1, lanes), lambda n: (0, 0)),        # col idx (resident)
            ],
            out_specs=pl.BlockSpec((C, lanes), lambda n: (0, n)),
        ),
        compiler_params=pltpu.CompilerParams(
            dimension_semantics=("parallel",),
            vmem_limit_bytes=64 * 1024 * 1024),
    )(x_cl, w1, w2, b1, b2, row, col)

    return jnp.transpose(out_cl.reshape(C, N, H, W), (1, 0, 2, 3))


# ---------------------------------------------------------------------------
# Pure-JAX reference (for correctness check)
# ---------------------------------------------------------------------------
def _ref_forward(x_nchw, params):
    x = jnp.transpose(x_nchw, (0, 2, 3, 1))
    dn = ("NHWC", "HWIO", "NHWC")

    def conv_bn(h, w, gamma, beta, mean, var):
        y = lax.conv_general_dilated(h, w, (1, 1), "SAME", dimension_numbers=dn,
                                     precision=lax.Precision.HIGHEST)
        scale, bias = _fold_bn(gamma, beta, mean, var)
        return y * scale + bias

    out = jnp.maximum(conv_bn(x, params["w1"], params["bn1_gamma"],
                              params["bn1_beta"], params["bn1_mean"],
                              params["bn1_var"]), 0.0)
    out = conv_bn(out, params["w2"], params["bn2_gamma"], params["bn2_beta"],
                  params["bn2_mean"], params["bn2_var"])
    out = jnp.maximum(out + x, 0.0)
    return jnp.transpose(out, (0, 3, 1, 2))


# ---------------------------------------------------------------------------
# Main
# ---------------------------------------------------------------------------
if __name__ == "__main__":
    N, C, H, W = 2, 4, 16, 16          # inplanes = planes = 4, stride = 1
    key = jax.random.PRNGKey(0)
    k = jax.random.split(key, 8)

    x = jax.random.normal(k[0], (N, C, H, W), jnp.float32)

    params = {
        # PyTorch conv weight is (Cout, Cin, 3, 3); stored here as HWIO.
        "w1": 0.1 * jax.random.normal(k[1], (3, 3, C, C), jnp.float32),
        "w2": 0.1 * jax.random.normal(k[2], (3, 3, C, C), jnp.float32),
        "bn1_gamma": 1.0 + 0.1 * jax.random.normal(k[3], (C,), jnp.float32),
        "bn1_beta": 0.1 * jax.random.normal(k[4], (C,), jnp.float32),
        "bn1_mean": 0.05 * jax.random.normal(k[5], (C,), jnp.float32),
        "bn1_var": 1.0 + 0.1 * jnp.abs(jax.random.normal(k[6], (C,), jnp.float32)),
        "bn2_gamma": jnp.ones((C,), jnp.float32),
        "bn2_beta": jnp.zeros((C,), jnp.float32),
        "bn2_mean": jnp.zeros((C,), jnp.float32),
        "bn2_var": 1.0 + 0.1 * jnp.abs(jax.random.normal(k[7], (C,), jnp.float32)),
    }

    out = jax.block_until_ready(basic_block_forward(x, params))
    ref = jax.block_until_ready(_ref_forward(x, params))

    assert out.shape == (N, C, H, W), out.shape
    # bf16 MXU inputs (f32 accumulation) -> relaxed tolerance vs. f32 reference.
    max_err = float(jnp.max(jnp.abs(out - ref)))
    assert jnp.allclose(out, ref, atol=5e-2, rtol=5e-2), max_err
    print("KERNEL_OK")
</pallas_src>

<mosaic_0001>
module attributes {stable_mosaic.version = 11 : i64} {
  func.func @_basic_block_kernel(%arg0: i32, %arg1: memref<4x512xf32, #tpu.memory_space<vmem>>, %arg2: memref<4x36xbf16, #tpu.memory_space<vmem>>, %arg3: memref<4x36xbf16, #tpu.memory_space<vmem>>, %arg4: memref<4x1xf32, #tpu.memory_space<vmem>>, %arg5: memref<4x1xf32, #tpu.memory_space<vmem>>, %arg6: memref<1x512xi32, #tpu.memory_space<vmem>>, %arg7: memref<1x512xi32, #tpu.memory_space<vmem>>, %arg8: memref<4x512xf32, #tpu.memory_space<vmem>>) attributes {dimension_semantics = [#tpu.dimension_semantics<parallel>], iteration_bounds = array<i64: 1>, scalar_prefetch = 0 : i64, scratch_operands = 0 : i64, tpu.core_type = #tpu.core_type<tc>, window_params = [{transform_indices = @transform_0, window_bounds = array<i64: 4, 512>}, {pipeline_mode = #tpu.pipeline_mode<synchronous>, transform_indices = @transform_1, window_bounds = array<i64: 4, 36>}, {pipeline_mode = #tpu.pipeline_mode<synchronous>, transform_indices = @transform_2, window_bounds = array<i64: 4, 36>}, {pipeline_mode = #tpu.pipeline_mode<synchronous>, transform_indices = @transform_3, window_bounds = array<i64: 4, 1>}, {pipeline_mode = #tpu.pipeline_mode<synchronous>, transform_indices = @transform_4, window_bounds = array<i64: 4, 1>}, {pipeline_mode = #tpu.pipeline_mode<synchronous>, transform_indices = @transform_5, window_bounds = array<i64: 1, 512>}, {pipeline_mode = #tpu.pipeline_mode<synchronous>, transform_indices = @transform_6, window_bounds = array<i64: 1, 512>}, {transform_indices = @transform_7, window_bounds = array<i64: 4, 512>}]} {
    %c0 = arith.constant 0 : index
    %c0_0 = arith.constant 0 : index
    %0 = vector.load %arg1[%c0, %c0_0] : memref<4x512xf32, #tpu.memory_space<vmem>>, vector<4x512xf32>
    %c0_1 = arith.constant 0 : index
    %c0_2 = arith.constant 0 : index
    %1 = vector.load %arg6[%c0_1, %c0_2] : memref<1x512xi32, #tpu.memory_space<vmem>>, vector<1x512xi32>
    %c0_3 = arith.constant 0 : index
    %c0_4 = arith.constant 0 : index
    %2 = vector.load %arg7[%c0_3, %c0_4] : memref<1x512xi32, #tpu.memory_space<vmem>>, vector<1x512xi32>
    %c1_i32 = arith.constant 1 : i32
    %3 = vector.broadcast %c1_i32 : i32 to vector<1x512xi32>
    %4 = arith.cmpi sge, %1, %3 : vector<1x512xi32>
    %c1_i32_5 = arith.constant 1 : i32
    %5 = vector.broadcast %c1_i32_5 : i32 to vector<1x512xi32>
    %6 = arith.cmpi sge, %2, %5 : vector<1x512xi32>
    %7 = arith.andi %4, %6 : vector<1x512xi1>
    %c15_i32 = arith.constant 15 : i32
    %8 = vector.broadcast %c15_i32 : i32 to vector<1x512xi32>
    %9 = arith.cmpi slt, %2, %8 : vector<1x512xi32>
    %10 = arith.andi %4, %9 : vector<1x512xi1>
    %c1_i32_6 = arith.constant 1 : i32
    %11 = vector.broadcast %c1_i32_6 : i32 to vector<1x512xi32>
    %12 = arith.cmpi sge, %2, %11 : vector<1x512xi32>
    %c15_i32_7 = arith.constant 15 : i32
    %13 = vector.broadcast %c15_i32_7 : i32 to vector<1x512xi32>
    %14 = arith.cmpi slt, %2, %13 : vector<1x512xi32>
    %c15_i32_8 = arith.constant 15 : i32
    %15 = vector.broadcast %c15_i32_8 : i32 to vector<1x512xi32>
    %16 = arith.cmpi slt, %1, %15 : vector<1x512xi32>
    %c1_i32_9 = arith.constant 1 : i32
    %17 = vector.broadcast %c1_i32_9 : i32 to vector<1x512xi32>
    %18 = arith.cmpi sge, %2, %17 : vector<1x512xi32>
    %19 = arith.andi %16, %18 : vector<1x512xi1>
    %c15_i32_10 = arith.constant 15 : i32
    %20 = vector.broadcast %c15_i32_10 : i32 to vector<1x512xi32>
    %21 = arith.cmpi slt, %2, %20 : vector<1x512xi32>
    %22 = arith.andi %16, %21 : vector<1x512xi1>
    %c17_i32 = arith.constant 17 : i32
    %23 = tpu.dynamic_rotate %0 by %c17_i32 dim 1 : vector<4x512xf32>, i32 -> vector<4x512xf32>
    %cst = arith.constant 0.000000e+00 : f32
    %24 = vector.shape_cast %7 : vector<1x512xi1> to vector<1x512xi1>
    %25 = vector.broadcast %24 : vector<1x512xi1> to vector<4x512xi1>
    %26 = vector.broadcast %cst : f32 to vector<4x512xf32>
    %27 = arith.select %25, %23, %26 : vector<4x512xi1>, vector<4x512xf32>
    %28 = arith.truncf %27 : vector<4x512xf32> to vector<4x512xbf16>
    %c16_i32 = arith.constant 16 : i32
    %29 = tpu.dynamic_rotate %0 by %c16_i32 dim 1 : vector<4x512xf32>, i32 -> vector<4x512xf32>
    %cst_11 = arith.constant 0.000000e+00 : f32
    %30 = vector.shape_cast %4 : vector<1x512xi1> to vector<1x512xi1>
    %31 = vector.broadcast %30 : vector<1x512xi1> to vector<4x512xi1>
    %32 = vector.broadcast %cst_11 : f32 to vector<4x512xf32>
    %33 = arith.select %31, %29, %32 : vector<4x512xi1>, vector<4x512xf32>
    %34 = arith.truncf %33 : vector<4x512xf32> to vector<4x512xbf16>
    %c15_i32_12 = arith.constant 15 : i32
    %35 = tpu.dynamic_rotate %0 by %c15_i32_12 dim 1 : vector<4x512xf32>, i32 -> vector<4x512xf32>
    %cst_13 = arith.constant 0.000000e+00 : f32
    %36 = vector.shape_cast %10 : vector<1x512xi1> to vector<1x512xi1>
    %37 = vector.broadcast %36 : vector<1x512xi1> to vector<4x512xi1>
    %38 = vector.broadcast %cst_13 : f32 to vector<4x512xf32>
    %39 = arith.select %37, %35, %38 : vector<4x512xi1>, vector<4x512xf32>
    %40 = arith.truncf %39 : vector<4x512xf32> to vector<4x512xbf16>
    %c1_i32_14 = arith.constant 1 : i32
    %41 = tpu.dynamic_rotate %0 by %c1_i32_14 dim 1 : vector<4x512xf32>, i32 -> vector<4x512xf32>
    %cst_15 = arith.constant 0.000000e+00 : f32
    %42 = vector.shape_cast %12 : vector<1x512xi1> to vector<1x512xi1>
    %43 = vector.broadcast %42 : vector<1x512xi1> to vector<4x512xi1>
    %44 = vector.broadcast %cst_15 : f32 to vector<4x512xf32>
    %45 = arith.select %43, %41, %44 : vector<4x512xi1>, vector<4x512xf32>
    %46 = arith.truncf %45 : vector<4x512xf32> to vector<4x512xbf16>
    %47 = arith.truncf %0 : vector<4x512xf32> to vector<4x512xbf16>
    %c511_i32 = arith.constant 511 : i32
    %48 = tpu.dynamic_rotate %0 by %c511_i32 dim 1 : vector<4x512xf32>, i32 -> vector<4x512xf32>
    %cst_16 = arith.constant 0.000000e+00 : f32
    %49 = vector.shape_cast %14 : vector<1x512xi1> to vector<1x512xi1>
    %50 = vector.broadcast %49 : vector<1x512xi1> to vector<4x512xi1>
    %51 = vector.broadcast %cst_16 : f32 to vector<4x512xf32>
    %52 = arith.select %50, %48, %51 : vector<4x512xi1>, vector<4x512xf32>
    %53 = arith.truncf %52 : vector<4x512xf32> to vector<4x512xbf16>
    %c497_i32 = arith.constant 497 : i32
    %54 = tpu.dynamic_rotate %0 by %c497_i32 dim 1 : vector<4x512xf32>, i32 -> vector<4x512xf32>
    %cst_17 = arith.constant 0.000000e+00 : f32
    %55 = vector.shape_cast %19 : vector<1x512xi1> to vector<1x512xi1>
    %56 = vector.broadcast %55 : vector<1x512xi1> to vector<4x512xi1>
    %57 = vector.broadcast %cst_17 : f32 to vector<4x512xf32>
    %58 = arith.select %56, %54, %57 : vector<4x512xi1>, vector<4x512xf32>
    %59 = arith.truncf %58 : vector<4x512xf32> to vector<4x512xbf16>
    %c496_i32 = arith.constant 496 : i32
    %60 = tpu.dynamic_rotate %0 by %c496_i32 dim 1 : vector<4x512xf32>, i32 -> vector<4x512xf32>
    %cst_18 = arith.constant 0.000000e+00 : f32
    %61 = vector.shape_cast %16 : vector<1x512xi1> to vector<1x512xi1>
    %62 = vector.broadcast %61 : vector<1x512xi1> to vector<4x512xi1>
    %63 = vector.broadcast %cst_18 : f32 to vector<4x512xf32>
    %64 = arith.select %62, %60, %63 : vector<4x512xi1>, vector<4x512xf32>
    %65 = arith.truncf %64 : vector<4x512xf32> to vector<4x512xbf16>
    %c495_i32 = arith.constant 495 : i32
    %66 = tpu.dynamic_rotate %0 by %c495_i32 dim 1 : vector<4x512xf32>, i32 -> vector<4x512xf32>
    %cst_19 = arith.constant 0.000000e+00 : f32
    %67 = vector.shape_cast %22 : vector<1x512xi1> to vector<1x512xi1>
    %68 = vector.broadcast %67 : vector<1x512xi1> to vector<4x512xi1>
    %69 = vector.broadcast %cst_19 : f32 to vector<4x512xf32>
    %70 = arith.select %68, %66, %69 : vector<4x512xi1>, vector<4x512xf32>
    %71 = arith.truncf %70 : vector<4x512xf32> to vector<4x512xbf16>
    %72 = tpu.concatenate %28, %34, %40, %46, %47, %53, %59, %65, %71 in 0 : vector<4x512xbf16>, vector<4x512xbf16>, vector<4x512xbf16>, vector<4x512xbf16>, vector<4x512xbf16>, vector<4x512xbf16>, vector<4x512xbf16>, vector<4x512xbf16>, vector<4x512xbf16> -> vector<36x512xbf16>
    %c0_20 = arith.constant 0 : index
    %c0_21 = arith.constant 0 : index
    %73 = vector.load %arg2[%c0_20, %c0_21] : memref<4x36xbf16, #tpu.memory_space<vmem>>, vector<4x36xbf16>
    %cst_22 = arith.constant dense<0.000000e+00> : vector<4x512xf32>
    %74 = tpu.matmul %73, %72, %cst_22 {dimension_numbers = #tpu.dot_dimension_numbers<[1], [0], [0], [1], [0, 0, 1, 1], [], []>} : vector<4x36xbf16>, vector<36x512xbf16>, vector<4x512xf32> -> vector<4x512xf32>
    %c0_23 = arith.constant 0 : index
    %c0_24 = arith.constant 0 : index
    %75 = vector.load %arg4[%c0_23, %c0_24] : memref<4x1xf32, #tpu.memory_space<vmem>>, vector<4x1xf32>
    %76 = vector.broadcast %75 : vector<4x1xf32> to vector<4x512xf32>
    %77 = arith.addf %74, %76 : vector<4x512xf32>
    %cst_25 = arith.constant 0.000000e+00 : f32
    %78 = vector.broadcast %cst_25 : f32 to vector<4x512xf32>
    %79 = arith.maximumf %77, %78 : vector<4x512xf32>
    %c17_i32_26 = arith.constant 17 : i32
    %80 = tpu.dynamic_rotate %79 by %c17_i32_26 dim 1 : vector<4x512xf32>, i32 -> vector<4x512xf32>
    %cst_27 = arith.constant 0.000000e+00 : f32
    %81 = vector.shape_cast %7 : vector<1x512xi1> to vector<1x512xi1>
    %82 = vector.broadcast %81 : vector<1x512xi1> to vector<4x512xi1>
    %83 = vector.broadcast %cst_27 : f32 to vector<4x512xf32>
    %84 = arith.select %82, %80, %83 : vector<4x512xi1>, vector<4x512xf32>
    %85 = arith.truncf %84 : vector<4x512xf32> to vector<4x512xbf16>
    %c16_i32_28 = arith.constant 16 : i32
    %86 = tpu.dynamic_rotate %79 by %c16_i32_28 dim 1 : vector<4x512xf32>, i32 -> vector<4x512xf32>
    %cst_29 = arith.constant 0.000000e+00 : f32
    %87 = vector.shape_cast %4 : vector<1x512xi1> to vector<1x512xi1>
    %88 = vector.broadcast %87 : vector<1x512xi1> to vector<4x512xi1>
    %89 = vector.broadcast %cst_29 : f32 to vector<4x512xf32>
    %90 = arith.select %88, %86, %89 : vector<4x512xi1>, vector<4x512xf32>
    %91 = arith.truncf %90 : vector<4x512xf32> to vector<4x512xbf16>
    %c15_i32_30 = arith.constant 15 : i32
    %92 = tpu.dynamic_rotate %79 by %c15_i32_30 dim 1 : vector<4x512xf32>, i32 -> vector<4x512xf32>
    %cst_31 = arith.constant 0.000000e+00 : f32
    %93 = vector.shape_cast %10 : vector<1x512xi1> to vector<1x512xi1>
    %94 = vector.broadcast %93 : vector<1x512xi1> to vector<4x512xi1>
    %95 = vector.broadcast %cst_31 : f32 to vector<4x512xf32>
    %96 = arith.select %94, %92, %95 : vector<4x512xi1>, vector<4x512xf32>
    %97 = arith.truncf %96 : vector<4x512xf32> to vector<4x512xbf16>
    %c1_i32_32 = arith.constant 1 : i32
    %98 = tpu.dynamic_rotate %79 by %c1_i32_32 dim 1 : vector<4x512xf32>, i32 -> vector<4x512xf32>
    %cst_33 = arith.constant 0.000000e+00 : f32
    %99 = vector.shape_cast %12 : vector<1x512xi1> to vector<1x512xi1>
    %100 = vector.broadcast %99 : vector<1x512xi1> to vector<4x512xi1>
    %101 = vector.broadcast %cst_33 : f32 to vector<4x512xf32>
    %102 = arith.select %100, %98, %101 : vector<4x512xi1>, vector<4x512xf32>
    %103 = arith.truncf %102 : vector<4x512xf32> to vector<4x512xbf16>
    %104 = arith.truncf %79 : vector<4x512xf32> to vector<4x512xbf16>
    %c511_i32_34 = arith.constant 511 : i32
    %105 = tpu.dynamic_rotate %79 by %c511_i32_34 dim 1 : vector<4x512xf32>, i32 -> vector<4x512xf32>
    %cst_35 = arith.constant 0.000000e+00 : f32
    %106 = vector.shape_cast %14 : vector<1x512xi1> to vector<1x512xi1>
    %107 = vector.broadcast %106 : vector<1x512xi1> to vector<4x512xi1>
    %108 = vector.broadcast %cst_35 : f32 to vector<4x512xf32>
    %109 = arith.select %107, %105, %108 : vector<4x512xi1>, vector<4x512xf32>
    %110 = arith.truncf %109 : vector<4x512xf32> to vector<4x512xbf16>
    %c497_i32_36 = arith.constant 497 : i32
    %111 = tpu.dynamic_rotate %79 by %c497_i32_36 dim 1 : vector<4x512xf32>, i32 -> vector<4x512xf32>
    %cst_37 = arith.constant 0.000000e+00 : f32
    %112 = vector.shape_cast %19 : vector<1x512xi1> to vector<1x512xi1>
    %113 = vector.broadcast %112 : vector<1x512xi1> to vector<4x512xi1>
    %114 = vector.broadcast %cst_37 : f32 to vector<4x512xf32>
    %115 = arith.select %113, %111, %114 : vector<4x512xi1>, vector<4x512xf32>
    %116 = arith.truncf %115 : vector<4x512xf32> to vector<4x512xbf16>
    %c496_i32_38 = arith.constant 496 : i32
    %117 = tpu.dynamic_rotate %79 by %c496_i32_38 dim 1 : vector<4x512xf32>, i32 -> vector<4x512xf32>
    %cst_39 = arith.constant 0.000000e+00 : f32
    %118 = vector.shape_cast %16 : vector<1x512xi1> to vector<1x512xi1>
    %119 = vector.broadcast %118 : vector<1x512xi1> to vector<4x512xi1>
    %120 = vector.broadcast %cst_39 : f32 to vector<4x512xf32>
    %121 = arith.select %119, %117, %120 : vector<4x512xi1>, vector<4x512xf32>
    %122 = arith.truncf %121 : vector<4x512xf32> to vector<4x512xbf16>
    %c495_i32_40 = arith.constant 495 : i32
    %123 = tpu.dynamic_rotate %79 by %c495_i32_40 dim 1 : vector<4x512xf32>, i32 -> vector<4x512xf32>
    %cst_41 = arith.constant 0.000000e+00 : f32
    %124 = vector.shape_cast %22 : vector<1x512xi1> to vector<1x512xi1>
    %125 = vector.broadcast %124 : vector<1x512xi1> to vector<4x512xi1>
    %126 = vector.broadcast %cst_41 : f32 to vector<4x512xf32>
    %127 = arith.select %125, %123, %126 : vector<4x512xi1>, vector<4x512xf32>
    %128 = arith.truncf %127 : vector<4x512xf32> to vector<4x512xbf16>
    %129 = tpu.concatenate %85, %91, %97, %103, %104, %110, %116, %122, %128 in 0 : vector<4x512xbf16>, vector<4x512xbf16>, vector<4x512xbf16>, vector<4x512xbf16>, vector<4x512xbf16>, vector<4x512xbf16>, vector<4x512xbf16>, vector<4x512xbf16>, vector<4x512xbf16> -> vector<36x512xbf16>
    %c0_42 = arith.constant 0 : index
    %c0_43 = arith.constant 0 : index
    %130 = vector.load %arg3[%c0_42, %c0_43] : memref<4x36xbf16, #tpu.memory_space<vmem>>, vector<4x36xbf16>
    %cst_44 = arith.constant dense<0.000000e+00> : vector<4x512xf32>
    %131 = tpu.matmul %130, %129, %cst_44 {dimension_numbers = #tpu.dot_dimension_numbers<[1], [0], [0], [1], [0, 0, 1, 1], [], []>} : vector<4x36xbf16>, vector<36x512xbf16>, vector<4x512xf32> -> vector<4x512xf32>
    %c0_45 = arith.constant 0 : index
    %c0_46 = arith.constant 0 : index
    %132 = vector.load %arg5[%c0_45, %c0_46] : memref<4x1xf32, #tpu.memory_space<vmem>>, vector<4x1xf32>
    %133 = vector.broadcast %132 : vector<4x1xf32> to vector<4x512xf32>
    %134 = arith.addf %131, %133 : vector<4x512xf32>
    %135 = arith.addf %134, %0 : vector<4x512xf32>
    %cst_47 = arith.constant 0.000000e+00 : f32
    %136 = vector.broadcast %cst_47 : f32 to vector<4x512xf32>
    %137 = arith.maximumf %135, %136 : vector<4x512xf32>
    %c0_48 = arith.constant 0 : index
    %c0_49 = arith.constant 0 : index
    %138 = vector.load %arg8[%c0_48, %c0_49] : memref<4x512xf32, #tpu.memory_space<vmem>>, vector<4x512xf32>
    tpu.vector_store %arg8[%c0_48, %c0_49], %137 {strides = array<i32>} : memref<4x512xf32, #tpu.memory_space<vmem>>, vector<4x512xf32>,
    return
  }
  func.func @transform_0(%arg0: i32) -> (i32, i32) {
    %c0_i32 = arith.constant 0 : i32
    %c0_i32_0 = arith.constant 0 : i32
    return %c0_i32, %arg0 : i32, i32
  }
  func.func @transform_1(%arg0: i32) -> (i32, i32) {
    %c0_i32 = arith.constant 0 : i32
    %c0_i32_0 = arith.constant 0 : i32
    %c0_i32_1 = arith.constant 0 : i32
    return %c0_i32, %c0_i32_0 : i32, i32
  }
  func.func @transform_2(%arg0: i32) -> (i32, i32) {
    %c0_i32 = arith.constant 0 : i32
    %c0_i32_0 = arith.constant 0 : i32
    %c0_i32_1 = arith.constant 0 : i32
    return %c0_i32, %c0_i32_0 : i32, i32
  }
  func.func @transform_3(%arg0: i32) -> (i32, i32) {
    %c0_i32 = arith.constant 0 : i32
    %c0_i32_0 = arith.constant 0 : i32
    %c0_i32_1 = arith.constant 0 : i32
    return %c0_i32, %c0_i32_0 : i32, i32
  }
  func.func @transform_4(%arg0: i32) -> (i32, i32) {
    %c0_i32 = arith.constant 0 : i32
    %c0_i32_0 = arith.constant 0 : i32
    %c0_i32_1 = arith.constant 0 : i32
    return %c0_i32, %c0_i32_0 : i32, i32
  }
  func.func @transform_5(%arg0: i32) -> (i32, i32) {
    %c0_i32 = arith.constant 0 : i32
    %c0_i32_0 = arith.constant 0 : i32
    %c0_i32_1 = arith.constant 0 : i32
    return %c0_i32, %c0_i32_0 : i32, i32
  }
  func.func @transform_6(%arg0: i32) -> (i32, i32) {
    %c0_i32 = arith.constant 0 : i32
    %c0_i32_0 = arith.constant 0 : i32
    %c0_i32_1 = arith.constant 0 : i32
    return %c0_i32, %c0_i32_0 : i32, i32
  }
  func.func @transform_7(%arg0: i32) -> (i32, i32) {
    %c0_i32 = arith.constant 0 : i32
    %c0_i32_0 = arith.constant 0 : i32
    return %c0_i32, %arg0 : i32, i32
  }
}

</mosaic_0001>

<bundles_post_ra>
// kernel: tpu_custom_call.1
= control target key start
LH: loop header
LB: loop body
LE: loop exit
PB: predicated region body
PF: predicated region fallthrough
CT: control target
= control target key end

     0   :  { %12 = vsyncpa [#allocation3], 0  ;;  %s2504_s0 = inlined_call_operand.hbm [shape: f32[4,512], index: 0, kind: input, shape index: {}]   ;;  %s2505_s1 = inlined_call_operand.hbm [shape: bf16[4,36], index: 1, kind: input, shape index: {}]   ;;  %s2506_s2 = inlined_call_operand.hbm [shape: bf16[4,36], index: 2, kind: input, shape index: {}]   ;;  %s2507_s3 = inlined_call_operand.hbm [shape: f32[4,1], index: 3, kind: input, shape index: {}]   ;;  %s2508_s4 = inlined_call_operand.hbm [shape: f32[4,1], index: 4, kind: input, shape index: {}]   ;;  %s2509_s5 = inlined_call_operand.hbm [shape: s32[1,512], index: 5, kind: input, shape index: {}]   ;;  %s2510_s6 = inlined_call_operand.hbm [shape: s32[1,512], index: 6, kind: input, shape index: {}]   ;;  %s2511_s7 = inlined_call_operand.hbm [shape: f32[4,512], index: 7, kind: output, shape index: {}]  }
   0x1   :  { %13 = vsyncpa [#allocation6], 0 }
   0x2   :  { %14 = vsyncpa [#allocation9], 0 }
   0x3   :  { %15 = vsyncpa [#allocation12], 0 }
   0x4   :  { %16 = vsyncpa [#allocation4], 0  ;;  %s1485_s24 = smov [#allocation5]   ;;  %s1486_s26 = smov [#allocation8]  }
   0x5   :  { %s33_s25 = sshll.u32 %s1485_s24, 4  ;;  %s53_s27 = sshll.u32 %s1486_s26, 4  ;;  %s34_s25 = int_to_ptr.vmem [resolvable:$true] %s33_s25  ;;  %s54_s27 = int_to_ptr.vmem [resolvable:$true] %s53_s27 }
   0x6   :  { %s1299_s30 = scalar_lea.hbm %s2505_s1, 32 }
   0x7   :  { %p1300_p0 = scmp.ne.s32.totalorder %s2505_s1, %s1299_s30  ;;  %p1303_p1 = scmp.lt.u32.totalorder %s1299_s30, %s2505_s1 }
   0x9   :  { %p1305_p2 = pnand %p1303_p1, %p1300_p0 }
   0xb   :  { %1308 = shalt.err (!%p1305_p2)
}
   0xc   :  { %s1309_s12 = scalar_lea.vmem %s34_s25, 32  ;;  %p1314_p4 = scmp.lt.s32.totalorder %s34_s25, %s34_s25 }
   0xd   :  { %p1310_p3 = scmp.ne.s32.totalorder %s34_s25, %s1309_s12  ;;  %p1315_p5 = scmp.lt.s32.totalorder %s1309_s12, %s1309_s12 }
   0xf   :  { %p1316_p6 = por %p1315_p5, %p1314_p4 }
  0x11   :  { %p1317_p7 = pnand %p1316_p6, %p1310_p3 }
  0x13   :  { %1320 = shalt.err (!%p1317_p7)
}
  0x14   :  { %36 = dma.hbm_to_vmem [thread:$0]  %s2505_s1, 32, %s34_s25, [#allocation6]  }
  0x15   :  { %s1321_s17 = scalar_lea.hbm %s2507_s3, 64 }
  0x16   :  { %p1322_p8 = scmp.ne.s32.totalorder %s2507_s3, %s1321_s17  ;;  %p1325_p9 = scmp.lt.u32.totalorder %s1321_s17, %s2507_s3 }
  0x18   :  { %p1327_p10 = pnand %p1325_p9, %p1322_p8 }
  0x1a   :  { %1330 = shalt.err (!%p1327_p10)
}
  0x1b   :  { %s1331_s22 = scalar_lea.vmem %s54_s27, 64  ;;  %p1336_p12 = scmp.lt.s32.totalorder %s54_s27, %s54_s27 }
  0x1c   :  { %p1332_p11 = scmp.ne.s32.totalorder %s54_s27, %s1331_s22  ;;  %p1337_p13 = scmp.lt.s32.totalorder %s1331_s22, %s1331_s22 }
  0x1e   :  { %p1338_p0 = por %p1337_p13, %p1336_p12 }
  0x20   :  { %p1339_p1 = pnand %p1338_p0, %p1332_p11 }
  0x22   :  { %1342 = shalt.err (!%p1339_p1)
}
  0x23   :  { %56 = dma.hbm_to_vmem [thread:$0]  %s2507_s3, 64, %s54_s27, [#allocation9]  }
  0x24   :  { %s1487_s24 = smov [#allocation11]   ;;  %s1488_s26 = smov [#allocation2]  }
  0x25   :  { %s73_s25 = sshll.u32 %s1487_s24, 4  ;;  %s23_s28 = sshll.u32 %s1488_s26, 4  ;;  %s74_s25 = int_to_ptr.vmem [resolvable:$true] %s73_s25  ;;  %s24_s28 = int_to_ptr.vmem [resolvable:$true] %s23_s28 }
  0x26   :  { %s1343_s8 = scalar_lea.hbm %s2509_s5, 64 }
  0x27   :  { %p1344_p2 = scmp.ne.s32.totalorder %s2509_s5, %s1343_s8  ;;  %p1347_p3 = scmp.lt.u32.totalorder %s1343_s8, %s2509_s5 }
  0x29   :  { %p1349_p4 = pnand %p1347_p3, %p1344_p2 }
  0x2b   :  { %1352 = shalt.err (!%p1349_p4)
}
  0x2c   :  { %s1353_s3 = scalar_lea.vmem %s74_s25, 64  ;;  %p1358_p6 = scmp.lt.s32.totalorder %s74_s25, %s74_s25 }
  0x2d   :  { %p1354_p5 = scmp.ne.s32.totalorder %s74_s25, %s1353_s3  ;;  %p1359_p7 = scmp.lt.s32.totalorder %s1353_s3, %s1353_s3 }
  0x2f   :  { %p1360_p8 = por %p1359_p7, %p1358_p6 }
  0x31   :  { %p1361_p9 = pnand %p1360_p8, %p1354_p5 }
  0x33   :  { %1364 = shalt.err (!%p1361_p9)
}
  0x34   :  { %76 = dma.hbm_to_vmem [thread:$0]  %s2509_s5, 64, %s74_s25, [#allocation12]  }
  0x35   :  { %s1365_s16 = scalar_lea.hbm %s2504_s0, 256 }
  0x36   :  { %p1366_p10 = scmp.ne.s32.totalorder %s2504_s0, %s1365_s16  ;;  %p1369_p11 = scmp.lt.u32.totalorder %s1365_s16, %s2504_s0 }
  0x38   :  { %p1371_p12 = pnand %p1369_p11, %p1366_p10 }
  0x3a   :  { %1374 = shalt.err (!%p1371_p12)
}
  0x3b   :  { %s1375_s21 = scalar_lea.vmem %s24_s28, 256  ;;  %p1380_p0 = scmp.lt.s32.totalorder %s24_s28, %s24_s28 }
  0x3c   :  { %p1376_p13 = scmp.ne.s32.totalorder %s24_s28, %s1375_s21  ;;  %p1381_p1 = scmp.lt.s32.totalorder %s1375_s21, %s1375_s21 }
  0x3e   :  { %p1382_p2 = por %p1381_p1, %p1380_p0 }
  0x40   :  { %p1383_p3 = pnand %p1382_p2, %p1376_p13 }
  0x42   :  { %1386 = shalt.err (!%p1383_p3)
}
  0x43   :  { %26 = dma.hbm_to_vmem [thread:$0]  %s2504_s0, 256, %s24_s28, [#allocation3]  }
  0x44   :  { %s1489_s1 = smov [#allocation7]   ;;  %s1490_s24 = smov [#allocation10]  }
  0x45   :  { %s43_s23 = sshll.u32 %s1489_s1, 4  ;;  %s63_s25 = sshll.u32 %s1490_s24, 4  ;;  %s44_s23 = int_to_ptr.vmem [resolvable:$true] %s43_s23  ;;  %s64_s25 = int_to_ptr.vmem [resolvable:$true] %s63_s25 }
  0x46   :  { %s1387_s30 = scalar_lea.hbm %s2506_s2, 32 }
  0x47   :  { %p1388_p4 = scmp.ne.s32.totalorder %s2506_s2, %s1387_s30  ;;  %p1391_p5 = scmp.lt.u32.totalorder %s1387_s30, %s2506_s2 }
  0x49   :  { %p1393_p6 = pnand %p1391_p5, %p1388_p4 }
  0x4b   :  { %1396 = shalt.err (!%p1393_p6)
}
  0x4c   :  { %s1397_s0 = scalar_lea.vmem %s44_s23, 32  ;;  %p1402_p8 = scmp.lt.s32.totalorder %s44_s23, %s44_s23 }
  0x4d   :  { %p1398_p7 = scmp.ne.s32.totalorder %s44_s23, %s1397_s0  ;;  %p1403_p9 = scmp.lt.s32.totalorder %s1397_s0, %s1397_s0 }
  0x4f   :  { %p1404_p10 = por %p1403_p9, %p1402_p8 }
  0x51   :  { %p1405_p11 = pnand %p1404_p10, %p1398_p7 }
  0x53   :  { %1408 = shalt.err (!%p1405_p11)
}
  0x54   :  { %46 = dma.hbm_to_vmem [thread:$0]  %s2506_s2, 32, %s44_s23, [#allocation6]  }
  0x55   :  { %s1409_s13 = scalar_lea.hbm %s2508_s4, 64 }
  0x56   :  { %p1410_p12 = scmp.ne.s32.totalorder %s2508_s4, %s1409_s13  ;;  %p1413_p13 = scmp.lt.u32.totalorder %s1409_s13, %s2508_s4 }
  0x58   :  { %p1415_p0 = pnand %p1413_p13, %p1410_p12 }
  0x5a   :  { %1418 = shalt.err (!%p1415_p0)
}
  0x5b   :  { %s1419_s18 = scalar_lea.vmem %s64_s25, 64  ;;  %p1424_p2 = scmp.lt.s32.totalorder %s64_s25, %s64_s25 }
  0x5c   :  { %p1420_p1 = scmp.ne.s32.totalorder %s64_s25, %s1419_s18  ;;  %p1425_p3 = scmp.lt.s32.totalorder %s1419_s18, %s1419_s18 }
  0x5e   :  { %p1426_p4 = por %p1425_p3, %p1424_p2 }
  0x60   :  { %p1427_p5 = pnand %p1426_p4, %p1420_p1 }
  0x62   :  { %1430 = shalt.err (!%p1427_p5)
}
  0x63   :  { %66 = dma.hbm_to_vmem [thread:$0]  %s2508_s4, 64, %s64_s25, [#allocation9]  }
  0x64   :  { %s1491_s20 = smov [#allocation13]   ;;  %s1431_s1 = scalar_lea.hbm %s2510_s6, 64 }
  0x65   :  { %s83_s21 = sshll.u32 %s1491_s20, 4  ;;  %p1432_p6 = scmp.ne.s32.totalorder %s2510_s6, %s1431_s1  ;;  %s84_s21 = int_to_ptr.vmem [resolvable:$true] %s83_s21 }
  0x66   :  { %p1435_p7 = scmp.lt.u32.totalorder %s1431_s1, %s2510_s6 }
  0x68   :  { %p1437_p8 = pnand %p1435_p7, %p1432_p6 }
  0x6a   :  { %1440 = shalt.err (!%p1437_p8)
}
  0x6b   :  { %s1441_s30 = scalar_lea.vmem %s84_s21, 64  ;;  %p1446_p10 = scmp.lt.s32.totalorder %s84_s21, %s84_s21 }
  0x6c   :  { %p1442_p9 = scmp.ne.s32.totalorder %s84_s21, %s1441_s30  ;;  %p1447_p11 = scmp.lt.s32.totalorder %s1441_s30, %s1441_s30 }
  0x6e   :  { %p1448_p12 = por %p1447_p11, %p1446_p10 }
  0x70   :  { %p1449_p13 = pnand %p1448_p12, %p1442_p9 }
  0x72   :  { %1452 = shalt.err (!%p1449_p13)
}
  0x73   :  { %86 = dma.hbm_to_vmem [thread:$0]  %s2510_s6, 64, %s84_s21, [#allocation12]  }
  0x74   :  { %1475 = dma.done.wait [#allocation3], 256  }
  0x75   :  { %1476 = vsyncadd [#allocation3], 4294967040 }
  0x76   :  { %1477 = dma.done.wait [#allocation6], 64  }
  0x77   :  { %1478 = vsyncadd [#allocation6], 4294967232 }
  0x78   :  { %1479 = dma.done.wait [#allocation9], 128  }
  0x79   :  { %1480 = vsyncadd [#allocation9], 4294967168 }
  0x7a   :  { %1481 = dma.done.wait [#allocation12], 128  }
  0x7b   :  { %1482 = vsyncadd [#allocation12], 4294967168  ;;  %v2512_v0 = vmov 0   ;;  %v1629_v1 = vld [vmem:[#allocation2] sm:$0xff]  ;;  %v1631_v2 = vld [vmem:[#allocation2 + $0x8] sm:$0xff]  ;;  %s1493_s6 = smov 15   ;;  %v135_v8 = vlaneseq }
  0x7c   :  { %639 = vmatprep.mubr.bf16.mxu0 %v2512_v0  ;;  %680 = vmatprep.mubr.bf16.mxu1 %v2512_v0  ;;  %v1635_v3 = vcombine.high %v1629_v1, %v1629_v1  ;;  %v1639_v4 = vcombine.high %v1631_v2, %v1631_v2  ;;  %s1494_s8 = smov 16   ;;  %s1495_s9 = smov 17   ;;  %v585_v7 = vld [vmem:[#allocation8] sm:$0xf]  ;;  %v111_v9 = vld [vmem:[#allocation11] sm:$0xf] }
  0x7d   :  { %1214 = vset.pattern.permute.xlu0 %v2512_v0  ;;  %s1496_s10 = smov 1   ;;  %s1497_s11 = smov 127   ;;  %v112_v10 = vld [vmem:[#allocation13] sm:$0xf]  ;;  %v144_v11 = vshrl.u32 %v135_v8, 7  ;;  %vm113_vm0 = vcmp.ge.s32.totalorder %v111_v9, 1 }
  0x7e   :  { %v1144_v5 = vpack.i.bf16 %v1635_v3, %v1629_v1  ;;  %v1149_v6 = vpack.i.bf16 %v1639_v4, %v1631_v2  ;;  %s1498_s0 = smov 113   ;;  %s1499_s28 = smov 112   ;;  %vm116_vm1 = vcmp.lt.s32.totalorder %v112_v10, 15  ;;  %vm114_vm2 = vcmp.ge.s32.totalorder %v112_v10, 1 }
  0x7f   :  { %s1500_s12 = smov 111   ;;  %v1661_v12 = vsub.s32 1, %v144_v11  ;;  %v1663_v13 = vand.u32 127, %v135_v8  ;;  %v184_v14 = vsel %vm113_vm0, 1, %v2512_v0  ;;  %vm117_vm3 = vmand %vm113_vm0, %vm116_vm1  ;;  %v1667_v15 = vsub.s32 0, %v144_v11  ;;  %s1501_s3 = smov [#allocation14]  }
  0x80   :  { %1145 = vrot.lane.b32.xlu1 %v1144_v5, %s1493_s6  ;;  %1135 = vrot.lane.b32.xlu0 %v1144_v5, %s1494_s8  ;;  %v1669_v16 = vsub.s32 2, %v144_v11  ;;  %vm115_vm4 = vmand %vm113_vm0, %vm114_vm2  ;;  %vm118_vm5 = vcmp.lt.s32.totalorder %v111_v9, 15  ;;  %v1672_v17 = vsub.s32 3, %v144_v11  ;;  %v226_v19 = vsel %vm117_vm3, 1, %v2512_v0  ;;  %s1097_s27 = sshll.u32 %s1501_s3, 4  ;;  %s1098_s27 = int_to_ptr.vmem [resolvable:$true] %s1097_s27 }
  0x81   :  { %v192_v18 = vrot.slane %v184_v14, %v1661_v12  ;;  %vm2515_vm6 = vcmp.lt.s32.totalorder %v1663_v13, 15  ;;  %v142_v20 = vsel %vm115_vm4, 1, %v2512_v0  ;;  %vm119_vm7 = vmand %vm118_vm5, %vm114_vm2  ;;  %vm2516_vm8 = vcmp.lt.s32.totalorder %v1663_v13, 16  ;;  %s1453_s13 = scalar_lea.vmem %s1098_s27, 256  ;;  %p1458_p1 = scmp.lt.s32.totalorder %s1098_s27, %s1098_s27 }
  0x82   :  { %v230_v21 = vrot.slane %v226_v19, %v1667_v15  ;;  %v238_v22 = vrot.slane %v226_v19, %v1669_v16  ;;  %v1685_v23 = vsel %vm116_vm1, 1, %v2512_v0  ;;  %v188_v24 = vrot.slane %v184_v14, %v1667_v15  ;;  %vm120_vm9 = vmand %vm118_vm5, %vm116_vm1  ;;  %p1454_p0 = scmp.ne.s32.totalorder %s1098_s27, %s1453_s13  ;;  %p1459_p2 = scmp.lt.s32.totalorder %s1453_s13, %s1453_s13 }
  0x83   :  { %v196_v25 = vrot.slane %v184_v14, %v1669_v16  ;;  %v200_v26 = vrot.slane %v184_v14, %v1672_v17  ;;  %v234_v27 = vrot.slane %v226_v19, %v1661_v12  ;;  %vm1693_vm10 = vcmp.eq.s32.totalorder %v192_v18, 1 }
  0x84   :  { %1150 = vrot.lane.b32.xlu1 %v1149_v6, %s1493_s6  ;;  %1140 = vrot.lane.b32.xlu0 %v1149_v6, %s1494_s8  ;;  %v2546_v28 = vmov 0  ;;  %v158_v29 = vrot.slane %v142_v20, %v1672_v17  ;;  %v146_v30 = vrot.slane %v142_v20, %v1667_v15  ;;  %v1700_v31 = vsel %vm119_vm7, 1, %v2512_v0  ;;  %p1460_p3 = por %p1459_p2, %p1458_p1 }
  0x85   :  { %v2547_v28 = vsel %vm1693_vm10, 4294967295, %v2546_v28  ;;  %v150_v32 = vrot.slane %v142_v20, %v1661_v12  ;;  %v154_v33 = vrot.slane %v142_v20, %v1669_v16  ;;  %v326_v34 = vrot.slane %v1685_v23, %v1669_v16 }
  0x86   :  { %v1708_v35 = vsel %vm114_vm2, 1, %v2512_v0  ;;  %vm1710_vm11 = vcmp.eq.s32.totalorder %v230_v21, 1  ;;  %v2548_v36 = vmov 0  ;;  %v318_v37 = vrot.slane %v1685_v23, %v1667_v15  ;;  %p1461_p4 = pnand %p1460_p3, %p1454_p0 }
  0x87   :  { %v2549_v36 = vsel %vm1710_vm11, 4294967295, %v2548_v36  ;;  %v322_v38 = vrot.slane %v1685_v23, %v1661_v12  ;;  %v330_v39 = vrot.slane %v1685_v23, %v1672_v17  ;;  %v1721_v40 = vsel %vm120_vm9, 1, %v2512_v0 }
  0x88   :  { %1160 = vrot.lane.b32.xlu1 %v1149_v6, %s1495_s9  ;;  %1155 = vrot.lane.b32.xlu0 %v1144_v5, %s1495_s9  ;;  %vm1723_vm12 = vcmp.eq.s32.totalorder %v238_v22, 1  ;;  %v2550_v41 = vmov 0  ;;  %vm1727_vm13 = vcmp.eq.s32.totalorder %v196_v25, 1  ;;  %v2552_v42 = vmov 0 }
  0x89   :  { %v2551_v41 = vsel %vm1723_vm12, 4294967295, %v2550_v41  ;;  %v2553_v42 = vsel %vm1727_vm13, 4294967295, %v2552_v42  ;;  %v368_v43 = vrot.slane %v1700_v31, %v1669_v16  ;;  %v360_v44 = vrot.slane %v1700_v31, %v1667_v15 }
  0x8a   :  { %vm1735_vm14 = vcmp.eq.s32.totalorder %v234_v27, 1  ;;  %v242_v46 = vrot.slane %v226_v19, %v1672_v17  ;;  %vm1740_vm15 = vcmp.eq.s32.totalorder %v188_v24, 1  ;;  %v2556_v47 = vmov 0 }
  0x8b   :  { %v2557_v47 = vsel %vm1740_vm15, 4294967295, %v2556_v47  ;;  %vm1744_vm0 = vcmp.eq.s32.totalorder %v200_v26, 1  ;;  %v2558_v48 = vmov 0  ;;  %v364_v49 = vrot.slane %v1700_v31, %v1661_v12 }
  0x8c   :  { %1170 = vrot.lane.b32.xlu1 %v1149_v6, %s1496_s10  ;;  %1165 = vrot.lane.b32.xlu0 %v1144_v5, %s1496_s10  ;;  %v2559_v48 = vsel %vm1744_vm0, 4294967295, %v2558_v48  ;;  %v372_v50 = vrot.slane %v1700_v31, %v1672_v17  ;;  %v276_v51 = vrot.slane %v1708_v35, %v1661_v12  ;;  %v1756_v52 = vsel %vm118_vm5, 1, %v2512_v0 }
  0x8d   :  { %v284_v55 = vrot.slane %v1708_v35, %v1672_v17  ;;  %v272_v56 = vrot.slane %v1708_v35, %v1667_v15  ;;  %vm1767_vm2 = vcmp.eq.s32.totalorder %v242_v46, 1  ;;  %v2560_v63 = vmov 0 }
  0x8e   :  { %v2561_v63 = vsel %vm1767_vm2, 4294967295, %v2560_v63  ;;  %vm1783_vm3 = vcmp.eq.s32.totalorder %v158_v29, 1  ;;  %v2562_v11 = vmov 0  ;;  %vm1787_vm4 = vcmp.eq.s32.totalorder %v154_v33, 1 }
  0x8f   :  { %v2563_v11 = vsel %vm1783_vm3, 4294967295, %v2562_v11  ;;  %v2565_v14 = vmov 0  ;;  %vm1797_vm5 = vcmp.eq.s32.totalorder %v146_v30, 1  ;;  %v2568_v24 = vmov 0 }
  0x90   :  { %1180 = vrot.lane.b32.xlu1 %v1149_v6, %s1497_s11  ;;  %1175 = vrot.lane.b32.xlu0 %v1144_v5, %s1497_s11  ;;  %2564 = vst [vmem:[#allocation20_spill] sm:$0xff] %v2563_v11  ;;  %v2566_v14 = vsel %vm1787_vm4, 4294967295, %v2565_v14  ;;  %v2569_v24 = vsel %vm1797_vm5, 4294967295, %v2568_v24  ;;  %vm1801_vm7 = vcmp.eq.s32.totalorder %v150_v32, 1  ;;  %vm1873_vm1 = vcmp.eq.s32.totalorder %v330_v39, 1 }
  0x91   :  { %2567 = vst [vmem:[#allocation21_spill] sm:$0xff] %v2566_v14  ;;  %2570 = vst [vmem:[#allocation22_spill] sm:$0xff] %v2569_v24  ;;  %vm2584_vm9 = vcmp.lt.s32.totalorder %v1663_v13, 17 }
  0x94   :  { %1190 = vrot.lane.b32.xlu1 %v1149_v6, %s1498_s0  ;;  %1185 = vrot.lane.b32.xlu0 %v1144_v5, %s1498_s0 }
  0x98   :  { %1200 = vrot.lane.b32.xlu1 %v1149_v6, %s1499_s28  ;;  %1195 = vrot.lane.b32.xlu0 %v1144_v5, %s1499_s28 }
  0x9c   :  { %1210 = vrot.lane.b32.xlu1 %v1149_v6, %s1500_s12  ;;  %1205 = vrot.lane.b32.xlu0 %v1144_v5, %s1500_s12 }
  0xa0   :  { %588 = vperm.xlu0 %1214, %v585_v7  }
  0xf2   :  { %v1146_v53 = vpop.permute.xlu1 %1145  ;;  %v1136_v54 = vpop.permute.xlu0 %1135 }
  0xf3   :  { %v1148_v59 = vunpack.i.h.bf16 %v1146_v53  ;;  %v1147_v60 = vunpack.i.l.bf16 %v1146_v53  ;;  %v1138_v61 = vunpack.i.h.bf16 %v1136_v54  ;;  %v1137_v62 = vunpack.i.l.bf16 %v1136_v54 }
  0xf5   :  { %v224_v9 = vsel %vm2515_vm6, %v1147_v60, %v1148_v59  ;;  %v182_v10 = vsel %vm2516_vm8, %v1137_v62, %v1138_v61 }
  0xf6   :  { %v206_v20 = vsel %vm1693_vm10, %v182_v10, 0.0  ;;  %v1151_v21 = vpop.permute.xlu1 %1150  ;;  %v1141_v22 = vpop.permute.xlu0 %1140  ;;  %v248_v26 = vsel %vm1735_vm14, %v224_v9, 0.0  ;;  %vm1866_vm10 = vcmp.eq.s32.totalorder %v322_v38, 1 }
  0xf7   :  { %v210_v33 = vpack.c.bf16 %v206_v20, %v206_v20  ;;  %v1153_v46 = vunpack.i.h.bf16 %v1151_v21  ;;  %v1152_v53 = vunpack.i.l.bf16 %v1151_v21  ;;  %v1143_v30 = vunpack.i.h.bf16 %v1141_v22 }
  0xf8   :  { %v1142_v54 = vunpack.i.l.bf16 %v1141_v22  ;;  %v252_v21 = vpack.c.bf16 %v248_v26, %v248_v26 }
  0xf9   :  { %v1817_v0 = vrot.slane %v210_v33, 6  ;;  %v223_v19 = vsel %vm2515_vm6, %v1148_v59, %v1152_v53  ;;  %v225_v20 = vsel %vm2515_vm6, %v1153_v46, %v1147_v60  ;;  %v222_v22 = vsel %vm2515_vm6, %v1152_v53, %v1153_v46 }
  0xfa   :  { %v1827_v29 = vsel %vm1710_vm11, %v225_v20, 0.0  ;;  %v180_v8 = vsel %vm2516_vm8, %v1142_v54, %v1143_v30  ;;  %v181_v33 = vsel %vm2516_vm8, %v1138_v61, %v1142_v54  ;;  %v1161_v6 = vpop.permute.xlu1 %1160  ;;  %v1156_v59 = vpop.permute.xlu0 %1155  ;;  %v1837_v60 = vsel %vm1723_vm12, %v223_v19, 0.0  ;;  %vm2585_vm12 = vmmov %vm2584_vm9 }
  0xfb   :  { %v183_v46 = vsel %vm2516_vm8, %v1143_v30, %v1137_v62  ;;  %v207_v53 = vsel %vm1727_vm13, %v181_v33, 0.0  ;;  %vm1848_vm6 = vcmp.eq.s32.totalorder %v326_v34, 1  ;;  %v2573_v61 = vmov 0 }
  0xfc   :  { %v2574_v61 = vsel %vm1848_vm6, 4294967295, %v2573_v61  ;;  %v205_v19 = vsel %vm1740_vm15, %v183_v46, 0.0  ;;  %v208_v54 = vsel %vm1744_vm0, %v180_v8, 0.0  ;;  %v211_v20 = vpack.c.bf16 %v207_v53, %v207_v53 }
  0xfd   :  { %2575 = vst [vmem:[#allocation23_spill] sm:$0xff] %v2574_v61  ;;  %v1163_v9 = vunpack.i.h.bf16 %v1161_v6  ;;  %vm1859_vm8 = vcmp.eq.s32.totalorder %v318_v37, 1  ;;  %v2576_v62 = vmov 0  ;;  %v2578_v34 = vmov 0 }
  0xfe   :  { %v2577_v62 = vsel %vm1859_vm8, 4294967295, %v2576_v62  ;;  %v2579_v34 = vsel %vm1866_vm10, 4294967295, %v2578_v34  ;;  %v2581_v8 = vmov 0  ;;  %v209_v30 = vpack.c.bf16 %v205_v19, %v205_v19  ;;  %v1881_v32 = vpop.permute.xlu1 %1170  ;;  %v1166_v26 = vpop.permute.xlu0 %1165 }
  0xff   :  { %2580 = vst [vmem:[#allocation24_spill] sm:$0xff] %v2579_v34  ;;  %v2582_v8 = vsel %vm1873_vm1, 4294967295, %v2581_v8  ;;  %v212_v33 = vpack.c.bf16 %v208_v54, %v208_v54  ;;  %v1162_v37 = vunpack.i.l.bf16 %v1161_v6  ;;  %v1158_v46 = vunpack.i.h.bf16 %v1156_v59 }
 0x100   :  { %2583 = vst [vmem:[#allocation25_spill] sm:$0xff] %v2582_v8  ;;  %v1879_v10 = vrot.slane %v211_v20, 6  ;;  %v1157_v38 = vunpack.i.l.bf16 %v1156_v59  ;;  %v1883_v27 = vrot.slane %v252_v21, 4  ;;  %v1885_v23 = vrot.slane %v209_v30, 6 }
 0x101   :  { %v138_v39 = vsel %vm2584_vm9, %v1162_v37, %v1163_v9  ;;  %v139_v6 = vsel %vm2585_vm12, %v1158_v46, %v1162_v37  ;;  %vm1894_vm11 = vcmp.eq.s32.totalorder %v276_v51, 1  ;;  %v2586_v19 = vmov 0  ;;  %vm2588_vm12 = vmmov %vm2584_vm9 }
 0x102   :  { %v2587_v19 = vsel %vm1894_vm11, 4294967295, %v2586_v19  ;;  %v1900_v59 = vsel %vm1767_vm2, %v222_v22, 0.0  ;;  %v1904_v21 = vsel %vm1783_vm3, %v138_v39, 0.0  ;;  %v1908_v54 = vsel %vm1787_vm4, %v139_v6, 0.0 }
 0x103   :  { %v140_v20 = vsel %vm2588_vm12, %v1157_v38, %v1158_v46  ;;  %v141_v51 = vsel %vm2584_vm9, %v1163_v9, %v1157_v38  ;;  %v1915_v30 = vrot.slane %v212_v33, 6  ;;  %vm1928_vm12 = vcmp.eq.s32.totalorder %v368_v43, 1 }
 0x104   :  { %v1921_v37 = vsel %vm1797_vm5, %v141_v51, 0.0  ;;  %v164_v39 = vsel %vm1801_vm7, %v140_v20, 0.0  ;;  %v2589_v46 = vmov 0  ;;  %vm1935_vm9 = vcmp.eq.s32.totalorder %v360_v44, 1  ;;  %v1176_v51 = vpop.permute.xlu0 %1175 }
 0x105   :  { %v2590_v46 = vsel %vm1928_vm12, 4294967295, %v2589_v46  ;;  %v2592_v9 = vmov 0  ;;  %vm1942_vm0 = vcmp.eq.s32.totalorder %v364_v49, 1  ;;  %v2594_v33 = vmov 0  ;;  %v1181_v49 = vpop.permute.xlu1 %1180 }
 0x106   :  { %2591 = vst [vmem:[#allocation26_spill] sm:$0xff] %v2590_v46  ;;  %v2593_v9 = vsel %vm1935_vm9, 4294967295, %v2592_v9  ;;  %v2595_v33 = vsel %vm1942_vm0, 4294967295, %v2594_v33  ;;  %vm1949_vm3 = vcmp.eq.s32.totalorder %v372_v50, 1  ;;  %v2596_v43 = vmov 0 }
 0x107   :  { %v2597_v43 = vsel %vm1949_vm3, 4294967295, %v2596_v43  ;;  %v168_v6 = vpack.c.bf16 %v164_v39, %v164_v39  ;;  %v1172_v20 = vunpack.i.l.bf16 %v1881_v32  ;;  %v1168_v53 = vunpack.i.h.bf16 %v1166_v26 }
 0x108   :  { %v1167_v22 = vunpack.i.l.bf16 %v1166_v26  ;;  %v1183_v18 = vunpack.i.h.bf16 %v1181_v49  ;;  %v1182_v5 = vunpack.i.l.bf16 %v1181_v49  ;;  %v1173_v31 = vunpack.i.h.bf16 %v1881_v32  ;;  %v1186_v7 = vpop.permute.xlu0 %1185 }
 0x109   :  { %v1178_v50 = vunpack.i.h.bf16 %v1176_v51  ;;  %v1177_v58 = vunpack.i.l.bf16 %v1176_v51  ;;  %vm2598_vm5 = vcmask 1041408   ;;  %vm2599_vm2 = vcmp.lt.s32.totalorder %v1663_v13, 1  ;;  %v1191_v51 = vpop.permute.xlu1 %1190 }
 0x10a   :  { %v523_v44 = vsel %vm2598_vm5, %v168_v6, %v1817_v0  ;;  %v1963_v38 = vsel %vm2599_vm2, %v1168_v53, %v1172_v20  ;;  %vm2600_vm13 = vcmp.lt.s32.totalorder %v1663_v13, 127  ;;  %vm2601_vm15 = vmmov %vm2599_vm2  ;;  %v254_v49 = vpack.c.bf16 %v1900_v59, %v1900_v59 }
 0x10b   :  { %v310_v39 = vsel %vm2600_vm13, %v1182_v5, %v1183_v18  ;;  %v266_v26 = vsel %vm2601_vm15, %v1167_v22, %v1168_v53  ;;  %vm1974_vm4 = vcmp.eq.s32.totalorder %v284_v55, 1  ;;  %v2602_v32 = vmov 0  ;;  %vm2607_vm15 = vmmov %vm2600_vm13 }
 0x10c   :  { %v2603_v32 = vsel %vm1974_vm4, 4294967295, %v2602_v32  ;;  %vm1981_vm2 = vcmp.eq.s32.totalorder %v272_v56, 1  ;;  %v2605_v0 = vmov 0  ;;  %v337_v53 = vsel %vm1848_vm6, %v310_v39, 0.0  ;;  %vm2608_vm5 = vmmov %vm2600_vm13 }
 0x10d   :  { %2604 = vst [vmem:[#allocation27_spill] sm:$0xff] %v2603_v32  ;;  %v2606_v0 = vsel %vm1981_vm2, 4294967295, %v2605_v0  ;;  %v311_v59 = vsel %vm2600_vm13, %v1178_v50, %v1182_v5  ;;  %v312_v6 = vsel %vm2607_vm15, %v1177_v58, %v1178_v50  ;;  %v313_v55 = vsel %vm2608_vm5, %v1183_v18, %v1177_v58 }
 0x10e   :  { %v341_v57 = vpack.c.bf16 %v337_v53, %v337_v53  ;;  %v336_v56 = vsel %vm1866_vm10, %v311_v59, 0.0  ;;  %v335_v11 = vsel %vm1859_vm8, %v312_v6, 0.0  ;;  %v338_v39 = vsel %vm1873_vm1, %v313_v55, 0.0 }
 0x10f   :  { %v2609_v5 = vrot.slane %v1708_v35, %v1669_v16  ;;  %v2610_v50 = vmov 0  ;;  %vm2612_vm15 = vcmp.lt.s32.totalorder %v1663_v13, 1  ;;  %v340_v18 = vpack.c.bf16 %v336_v56, %v336_v56 }
 0x110   :  { %v267_v58 = vsel %vm2612_vm15, %v1173_v31, %v1167_v22  ;;  %v339_v53 = vpack.c.bf16 %v335_v11, %v335_v11  ;;  %v1193_v59 = vunpack.i.h.bf16 %v1191_v51  ;;  %v342_v61 = vpack.c.bf16 %v338_v39, %v338_v39 }
 0x111   :  { %vm2002_vm13 = vcmp.eq.s32.totalorder %v2609_v5, 1  ;;  %v1192_v34 = vunpack.i.l.bf16 %v1191_v51  ;;  %v1188_v6 = vunpack.i.h.bf16 %v1186_v7  ;;  %v1187_v14 = vunpack.i.l.bf16 %v1186_v7 }
 0x112   :  { %v2611_v50 = vsel %vm2002_vm13, 4294967295, %v2610_v50  ;;  %v2008_v8 = vrot.slane %v341_v57, 6  ;;  %v2010_v55 = vrot.slane %v340_v18, 6  ;;  %v2012_v24 = vrot.slane %v339_v53, 6 }
 0x113   :  { %v290_v35 = vsel %vm1894_vm11, %v266_v26, 0.0  ;;  %vm2613_vm5 = vcmp.lt.s32.totalorder %v1663_v13, 113  ;;  %v2033_v56 = vrot.slane %v342_v61, 6 }
 0x114   :  { %v352_v5 = vsel %vm2613_vm5, %v1192_v34, %v1193_v59  ;;  %vm2614_vm15 = vmmov %vm2613_vm5 }
 0x115   :  { %v353_v11 = vsel %vm2614_vm15, %v1188_v6, %v1192_v34  ;;  %vm2615_vm6 = vmmov %vm2613_vm5  ;;  %v379_v7 = vsel %vm1928_vm12, %v352_v5, 0.0  ;;  %v294_v5 = vpack.c.bf16 %v290_v35, %v290_v35  ;;  %vm2632_vm15 = vcmask 1041408  }
 0x116   :  { %v354_v22 = vsel %vm2615_vm6, %v1187_v14, %v1188_v6  ;;  %vm2616_vm10 = vmmov %vm2613_vm5  ;;  %v378_v26 = vsel %vm1942_vm0, %v353_v11, 0.0  ;;  %v383_v39 = vpack.c.bf16 %v379_v7, %v379_v7  ;;  %vm2621_vm5 = vcmp.lt.s32.totalorder %v1663_v13, 1 }
 0x117   :  { %v355_v57 = vsel %vm2616_vm10, %v1193_v59, %v1187_v14  ;;  %v377_v51 = vsel %vm1935_vm9, %v354_v22, 0.0  ;;  %v382_v18 = vpack.c.bf16 %v378_v26, %v378_v26  ;;  %v2617_v14 = vrot.slane %v1756_v52, %v1661_v12 }
 0x118   :  { %v380_v34 = vsel %vm1949_vm3, %v355_v57, 0.0  ;;  %v381_v53 = vpack.c.bf16 %v377_v51, %v377_v51  ;;  %vm2620_vm10 = vcmask 1043456   ;;  %v264_v22 = vsel %vm2621_vm5, %v1172_v20, %v1173_v31  ;;  %v1201_v51 = vpop.permute.xlu1 %1200 }
 0x119   :  { %vm2038_vm6 = vcmp.eq.s32.totalorder %v2617_v14, 1  ;;  %v384_v6 = vpack.c.bf16 %v380_v34, %v380_v34  ;;  %v534_v11 = vsel %vm2620_vm10, %v523_v44, %v1883_v27  ;;  %v2047_v61 = vrot.slane %v383_v39, 4 }
 0x11a   :  { %v506_v57 = vrot.slane %v382_v18, 4  ;;  %v2049_v7 = vrot.slane %v381_v53, 4  ;;  %v484_v26 = vrot.slane %v254_v49, 4  ;;  %v2622_v14 = vrot.slane %v1721_v40, %v1661_v12  ;;  %v1196_v53 = vpop.permute.xlu0 %1195 }
 0x11b   :  { %v2625_v27 = vrot.slane %v1721_v40, %v1672_v17  ;;  %v2628_v20 = vrot.slane %v1756_v52, %v1672_v17  ;;  %v490_v49 = vrot.slane %v294_v5, 2  ;;  %v292_v12 = vsel %vm1974_vm4, %v264_v22, 0.0 }
 0x11c   :  { %vm2054_vm1 = vcmp.eq.s32.totalorder %v2622_v14, 1  ;;  %v2631_v34 = vpack.c.bf16 %v1904_v21, %v1904_v21  ;;  %v289_v18 = vsel %vm1981_vm2, %v267_v58, 0.0  ;;  %v2633_v17 = vrot.slane %v1756_v52, %v1667_v15 }
 0x11d   :  { %vm2061_vm10 = vcmp.eq.s32.totalorder %v2625_v27, 1  ;;  %vm2068_vm5 = vcmp.eq.s32.totalorder %v2628_v20, 1  ;;  %v296_v5 = vpack.c.bf16 %v292_v12, %v292_v12  ;;  %vm2636_vm0 = vcmask 1043456  }
 0x11e   :  { %v529_v39 = vsel %vm2632_vm15, %v2631_v34, %v1915_v30  ;;  %vm2084_vm12 = vcmp.eq.s32.totalorder %v2633_v17, 1  ;;  %v293_v27 = vpack.c.bf16 %v289_v18, %v289_v18  ;;  %v2637_v21 = vpack.c.bf16 %v1827_v29, %v1827_v29  ;;  %v1206_v32 = vpop.permute.xlu0 %1205 }
 0x11f   :  { %v538_v22 = vsel %vm2636_vm0, %v529_v39, %v484_v26  ;;  %v2638_v30 = vrot.slane %v1756_v52, %v1669_v16  ;;  %vm2641_vm4 = vcmask 1045504   ;;  %v2642_v12 = vpack.c.bf16 %v1921_v37, %v1921_v37 }
 0x120   :  { %v481_v20 = vrot.slane %v2637_v21, 4  ;;  %v544_v34 = vsel %vm2641_vm4, %v534_v11, %v490_v49  ;;  %vm2643_vm3 = vcmask 1041408   ;;  %v291_v29 = vsel %vm2002_vm13, %v1963_v38, 0.0  ;;  %v1211_v49 = vpop.permute.xlu1 %1210  ;;  %vm2646_vm13 = vmmov %vm2641_vm4 }
 0x121   :  { %vm2095_vm15 = vcmp.eq.s32.totalorder %v2638_v30, 1  ;;  %v520_v26 = vsel %vm2643_vm3, %v2642_v12, %v1885_v23  ;;  %v2644_v39 = vpack.c.bf16 %v1837_v60, %v1837_v60  ;;  %607 = vmatprep.subr.bf16.mxu0 %v544_v34  ;;  %v492_v18 = vrot.slane %v296_v5, 2 }
 0x122   :  { %v489_v17 = vrot.slane %v293_v27, 2  ;;  %v532_v21 = vsel %vm2636_vm0, %v520_v26, %v481_v20  ;;  %v295_v11 = vpack.c.bf16 %v291_v29, %v291_v29  ;;  %v2645_v37 = vpack.c.bf16 %v1908_v54, %v1908_v54 }
 0x123   :  { %v483_v52 = vrot.slane %v2644_v39, 4  ;;  %v1203_v30 = vunpack.i.h.bf16 %v1201_v51  ;;  %v1202_v12 = vunpack.i.l.bf16 %v1201_v51  ;;  %v1198_v38 = vunpack.i.h.bf16 %v1196_v53 }
 0x124   :  { %v526_v23 = vsel %vm2643_vm3, %v2645_v37, %v1879_v10  ;;  %v508_v46 = vrot.slane %v384_v6, 4  ;;  %v550_v60 = vsel %vm2641_vm4, %v538_v22, %v492_v18  ;;  %v541_v5 = vsel %vm2646_vm13, %v532_v21, %v489_v17 }
 0x125   :  { %v491_v27 = vrot.slane %v295_v11, 2  ;;  %v2647_v20 = vrot.slane %v1721_v40, %v1667_v15  ;;  %v2650_v10 = vrot.slane %v1721_v40, %v1669_v16  ;;  %648 = vmatprep.subr.bf16.mxu1 %v550_v60  ;;  %608 = vmatpush1.bf16.msra.mxu0 %v541_v5  ;;  %vm2653_vm4 = vcmask 1043456  }
 0x126   :  { %v536_v6 = vsel %vm2653_vm4, %v526_v23, %v483_v52  ;;  %vm2654_vm13 = vcmp.lt.s32.totalorder %v1663_v13, 112  ;;  %v1197_v22 = vunpack.i.l.bf16 %v1196_v53  ;;  %v1213_v15 = vunpack.i.h.bf16 %v1211_v49 }
 0x127   :  { %vm2122_vm0 = vcmp.eq.s32.totalorder %v2647_v20, 1  ;;  %vm2129_vm3 = vcmp.eq.s32.totalorder %v2650_v10, 1  ;;  %v395_v51 = vsel %vm2654_vm13, %v1198_v38, %v1202_v12  ;;  %vm2655_vm2 = vcmask 1045504   ;;  %vm2656_vm9 = vmmov %vm2654_vm13 }
 0x128   :  { %v547_v26 = vsel %vm2655_vm2, %v536_v6, %v491_v27  ;;  %v1212_v29 = vunpack.i.l.bf16 %v1211_v49  ;;  %v1208_v39 = vunpack.i.h.bf16 %v1206_v32  ;;  %v1207_v18 = vunpack.i.l.bf16 %v1206_v32  ;;  %vm2657_vm8 = vmmov %vm2656_vm9 }
 0x129   :  { %649 = vmatpush1.bf16.msra.mxu1 %v547_v26  ;;  %v394_v16 = vsel %vm2656_vm9, %v1202_v12, %v1203_v30  ;;  %v396_v40 = vsel %vm2657_vm8, %v1197_v22, %v1198_v38  ;;  %vm2658_vm11 = vmmov %vm2657_vm8  ;;  %v420_v17 = vsel %vm2038_vm6, %v395_v51, 0.0  ;;  %vm2659_vm4 = vcmp.lt.s32.totalorder %v1663_v13, 111 }
 0x12a   :  { %v397_v52 = vsel %vm2658_vm11, %v1203_v30, %v1197_v22  ;;  %v437_v53 = vsel %vm2659_vm4, %v1208_v39, %v1212_v29  ;;  %vm2660_vm2 = vmmov %vm2659_vm4  ;;  %v424_v32 = vpack.c.bf16 %v420_v17, %v420_v17  ;;  %v2661_v11 = vpack.c.bf16 %v1635_v3, %v1635_v3 }
 0x12b   :  { %v439_v21 = vsel %vm2660_vm2, %v1213_v15, %v1207_v18  ;;  %vm2662_vm9 = vcmask 1041408   ;;  %v462_v37 = vsel %vm2054_vm1, %v437_v53, 0.0  ;;  %vm2663_vm8 = vcmask 1043456  }
 0x12c   :  { %v557_v49 = vsel %vm2662_vm9, %v2661_v11, %v2010_v55  ;;  %v464_v23 = vsel %vm2061_vm10, %v439_v21, 0.0  ;;  %v422_v12 = vsel %vm2068_vm5, %v397_v52, 0.0  ;;  %v514_v38 = vrot.slane %v424_v32, 2  ;;  %vm2665_vm11 = vmmov %vm2662_vm9 }
 0x12d   :  { %v567_v30 = vsel %vm2663_vm8, %v557_v49, %v506_v57  ;;  %v426_v60 = vpack.c.bf16 %v422_v12, %v422_v12  ;;  %v2664_v5 = vpack.c.bf16 %v1639_v4, %v1639_v4  ;;  %v419_v55 = vsel %vm2084_vm12, %v396_v40, 0.0  ;;  %vm2666_vm13 = vmmov %vm2663_vm8 }
 0x12e   :  { %v423_v10 = vpack.c.bf16 %v419_v55, %v419_v55  ;;  %v2667_v57 = vpack.c.bf16 %v1629_v1, %v1629_v1  ;;  %vm2668_vm4 = vmmov %vm2662_vm9  ;;  %v421_v51 = vsel %vm2095_vm15, %v394_v16, 0.0  ;;  %vm2669_vm2 = vcmask 1045504  }
 0x12f   :  { %v563_v27 = vsel %vm2665_vm11, %v2664_v5, %v2033_v56  ;;  %v576_v22 = vsel %vm2669_vm2, %v567_v30, %v514_v38  ;;  %v516_v26 = vrot.slane %v426_v60, 2  ;;  %v425_v52 = vpack.c.bf16 %v421_v51, %v421_v51  ;;  %vm2671_vm9 = vmmov %vm2668_vm4 }
 0x130   :  { %v571_v20 = vsel %vm2666_vm13, %v563_v27, %v508_v46  ;;  %v554_v6 = vsel %vm2668_vm4, %v2667_v57, %v2012_v24  ;;  %v2670_v56 = vpack.c.bf16 %v1631_v2, %v1631_v2  ;;  %609 = vmatprep.subr.bf16.mxu0 %v576_v22  ;;  %v513_v40 = vrot.slane %v423_v10, 2  ;;  %vm2672_vm11 = vmmov %vm2669_vm2 }
 0x131   :  { %v565_v1 = vsel %vm2663_vm8, %v554_v6, %v2049_v7  ;;  %v466_v17 = vpack.c.bf16 %v462_v37, %v462_v37  ;;  %v468_v24 = vpack.c.bf16 %v464_v23, %v464_v23  ;;  %v582_v53 = vsel %vm2672_vm11, %v571_v20, %v516_v26  ;;  %v589_v23 = vpop.permute.xlu0 %588 }
 0x132   :  { %v560_v46 = vsel %vm2671_vm9, %v2670_v56, %v2008_v8  ;;  %v515_v16 = vrot.slane %v425_v52, 2  ;;  %vm2673_vm13 = vcmp.lt.s32.totalorder %v1663_v13, 111  ;;  %650 = vmatprep.subr.bf16.mxu1 %v582_v53  ;;  %v573_v2 = vsel %vm2669_vm2, %v565_v1, %v513_v40  ;;  %vm2675_vm9 = vmmov %vm2663_vm8  ;;  %v970_v1 = vld [vmem:[#allocation10] sm:$0xf] }
 0x133   :  { %v438_v21 = vsel %vm2673_vm13, %v1207_v18, %v1208_v39  ;;  %vm2674_vm4 = vmmov %vm2673_vm13  ;;  %v569_v8 = vsel %vm2675_vm9, %v560_v46, %v2047_v61  ;;  %610 = vmatpush1.bf16.msra.mxu0 %v573_v2  ;;  %vm2677_vm11 = vcmask 1041408   ;;  %vm591_vm9 = vcmask 293888  }
 0x134   :  { %v436_v32 = vsel %vm2674_vm4, %v1212_v29, %v1213_v15  ;;  %v461_v7 = vsel %vm2122_vm0, %v438_v21, 0.0  ;;  %vm2676_vm8 = vmmov %vm2669_vm2  ;;  %1109 = vmatprep.subr.msk.bf16.mxu0 %vm2677_vm11, %v466_v17  ;;  %v584_v29 = vld [vmem:[#allocation5] sm:$0x3]  ;;  %v2681_v18 = vmov 0  }
 0x135   :  { %v463_v11 = vsel %vm2129_vm3, %v436_v32, 0.0  ;;  %v579_v49 = vsel %vm2676_vm8, %v569_v8, %v515_v16  ;;  %v465_v37 = vpack.c.bf16 %v461_v7, %v461_v7  ;;  %vm2678_vm13 = vmmov %vm2677_vm11  ;;  %vm2682_vm8 = vcmp.lt.s32.totalorder %v1663_v13, 15 }
 0x136   :  { %v467_v39 = vpack.c.bf16 %v463_v11, %v463_v11  ;;  %651 = vmatpush1.bf16.msra.mxu1 %v579_v49  ;;  %vm2679_vm4 = vmmov %vm2677_vm11  ;;  %vm2683_vm11 = vcmp.lt.s32.totalorder %v1663_v13, 16 }
 0x137   :  { %1111 = vmatprep.subr.msk.bf16.mxu1 %vm2678_vm13, %v468_v24  ;;  %v596_v15 = vsel %vm2679_vm4, %v465_v37, 0  ;;  %vm2680_vm2 = vmmov %vm2679_vm4  ;;  %vm2684_vm13 = vnez %v2547_v28  ;;  %vm2685_vm4 = vcmp.lt.s32.totalorder %v1663_v13, 17 }
 0x138   :  { %v602_v61 = vsel %vm2680_vm2, %v467_v39, 0  ;;  %612 = vmatpush1.bf16.msra.mxu0 %v596_v15  ;;  %vm2687_vm2 = vmmov %vm2683_vm11 }
 0x13a   :  { %653 = vmatpush1.bf16.msra.mxu1 %v602_v61 }
 0x13b   :  { %1110 = vmatmul.mubr.msk.bf16.vlgmr.msra.gmra.mrb[0].mxu0 %vm591_vm9, %v584_v29 }
 0x13c   :  { %1023 = vmatprep.mubr.bf16.mxu0 %v2681_v18 }
 0x13d   :  { %1112 = vmatmul.mubr.msk.bf16.vlgmr.msra.gmra.mrb[0].mxu1 %vm591_vm9, %v584_v29 }
 0x13e   :  { %1064 = vmatprep.mubr.bf16.mxu1 %v2681_v18 }
 0x20e   :  { %v641_v30 = vpop.f32.mrb[0].mxu0 }
 0x20f   :  { %v642_v12 = vadd.f32 %v641_v30, %v589_v23  ;;  %v643_v60 = vpop.f32.mrb[1].mxu0 }
 0x210   :  { %v682_v38 = vpop.f32.mrb[0].mxu1  ;;  %v644_v27 = vadd.f32 %v643_v60, %v589_v23  ;;  %v645_v20 = vpop.f32.mrb[2].mxu0 }
 0x211   :  { %v683_v5 = vadd.f32 %v682_v38, %v589_v23  ;;  %v684_v55 = vpop.f32.mrb[1].mxu1  ;;  %v2205_v10 = vmax.f32 %v642_v12, 0.0  ;;  %v646_v6 = vpop.f32.mrb[3].mxu0 }
 0x212   :  { %v685_v57 = vadd.f32 %v684_v55, %v589_v23  ;;  %v686_v51 = vpop.f32.mrb[2].mxu1  ;;  %v2209_v26 = vmax.f32 %v644_v27, 0.0 }
 0x213   :  { %v2207_v22 = vmax.f32 %v683_v5, 0.0  ;;  %v687_v52 = vpop.f32.mrb[3].mxu1  ;;  %v773_v23 = vpack.c.bf16 %v2205_v10, %v2205_v10 }
 0x214   :  { %v2211_v56 = vmax.f32 %v685_v57, 0.0  ;;  %v1225_v46 = vpack.i.bf16 %v2209_v26, %v2205_v10  ;;  %v774_v28 = vpack.c.bf16 %v2209_v26, %v2209_v26 }
 0x216   :  { %v1220_v40 = vpack.i.bf16 %v2211_v56, %v2207_v22  ;;  %1226 = vrot.lane.b32.xlu0 %v1225_v46, %s1493_s6  ;;  %1216 = vrot.lane.b32.xlu1 %v1225_v46, %s1494_s8  ;;  %v776_v12 = vpack.c.bf16 %v2211_v56, %v2211_v56 }
 0x21a   :  { %1236 = vrot.lane.b32.xlu0 %v1225_v46, %s1495_s9  ;;  %1221 = vrot.lane.b32.xlu1 %v1220_v40, %s1494_s8 }
 0x21e   :  { %1246 = vrot.lane.b32.xlu0 %v1225_v46, %s1496_s10  ;;  %1231 = vrot.lane.b32.xlu1 %v1220_v40, %s1493_s6 }
 0x222   :  { %1256 = vrot.lane.b32.xlu0 %v1225_v46, %s1497_s11  ;;  %1241 = vrot.lane.b32.xlu1 %v1220_v40, %s1495_s9 }
 0x226   :  { %1266 = vrot.lane.b32.xlu0 %v1225_v46, %s1498_s0  ;;  %1251 = vrot.lane.b32.xlu1 %v1220_v40, %s1496_s10 }
 0x22a   :  { %1276 = vrot.lane.b32.xlu0 %v1225_v46, %s1499_s28  ;;  %1261 = vrot.lane.b32.xlu1 %v1220_v40, %s1497_s11 }
 0x22e   :  { %1286 = vrot.lane.b32.xlu0 %v1225_v46, %s1500_s12  ;;  %1271 = vrot.lane.b32.xlu1 %v1220_v40, %s1498_s0 }
 0x232   :  { %973 = vperm.xlu0 %1214, %v970_v1   ;;  %1281 = vrot.lane.b32.xlu1 %v1220_v40, %s1499_s28  ;;  %v775_v1 = vpack.c.bf16 %v2207_v22, %v2207_v22 }
 0x236   :  { %1291 = vrot.lane.b32.xlu1 %v1220_v40, %s1500_s12 }
 0x288   :  { %v1227_v17 = vpop.permute.xlu0 %1226  ;;  %v1217_v24 = vpop.permute.xlu1 %1216 }
 0x289   :  { %v1229_v53 = vunpack.i.h.bf16 %v1227_v17  ;;  %v1228_v16 = vunpack.i.l.bf16 %v1227_v17  ;;  %v1219_v21 = vunpack.i.h.bf16 %v1217_v24  ;;  %v1218_v32 = vunpack.i.l.bf16 %v1217_v24 }
 0x28b   :  { %v743_v2 = vsel %vm2682_vm8, %v1228_v16, %v1229_v53  ;;  %v723_v8 = vsel %vm2683_vm11, %v1218_v32, %v1219_v21  ;;  %vm2688_vm8 = vmmov %vm2687_vm2 }
 0x28c   :  { %v746_v7 = vsel %vm1735_vm14, %v743_v2, 0.0  ;;  %v726_v11 = vsel %vm2684_vm13, %v723_v8, 0.0  ;;  %v2241_v49 = vpop.permute.xlu0 %1236  ;;  %v1222_v37 = vpop.permute.xlu1 %1221  ;;  %vm2686_vm14 = vmmov %vm2683_vm11  ;;  %vm2689_vm11 = vnez %v2557_v47  ;;  %vm2690_vm13 = vnez %v2553_v42 }
 0x28d   :  { %v1239_v39 = vunpack.i.h.bf16 %v2241_v49  ;;  %v1238_v15 = vunpack.i.l.bf16 %v2241_v49  ;;  %v730_v61 = vpack.c.bf16 %v726_v11, %v726_v11  ;;  %v1224_v29 = vunpack.i.h.bf16 %v1222_v37 }
 0x28e   :  { %v1223_v18 = vunpack.i.l.bf16 %v1222_v37  ;;  %v750_v30 = vpack.c.bf16 %v746_v7, %v746_v7 }
 0x28f   :  { %v703_v45 = vsel %vm2685_vm4, %v1238_v15, %v1239_v39  ;;  %v724_v27 = vsel %vm2688_vm8, %v1224_v29, %v1218_v32  ;;  %v862_v52 = vrot.slane %v730_v61, 6  ;;  %vm2692_vm4 = vcmask 1041408  }
 0x290   :  { %v706_v38 = vsel %vm1801_vm7, %v703_v45, 0.0  ;;  %v721_v60 = vsel %vm2686_vm14, %v1223_v18, %v1224_v29  ;;  %v722_v5 = vsel %vm2687_vm2, %v1219_v21, %v1223_v18  ;;  %v2261_v55 = vpop.permute.xlu0 %1246  ;;  %v1232_v20 = vpop.permute.xlu1 %1231  ;;  %v725_v6 = vsel %vm2689_vm11, %v724_v27, 0.0 }
 0x291   :  { %v710_v57 = vpack.c.bf16 %v706_v38, %v706_v38  ;;  %v727_v25 = vsel %vm2690_vm13, %v722_v5, 0.0  ;;  %vm2691_vm7 = vnez %v2559_v48  ;;  %v729_v46 = vpack.c.bf16 %v725_v6, %v725_v6 }
 0x292   :  { %v728_v51 = vsel %vm2691_vm7, %v721_v60, 0.0  ;;  %v1249_v40 = vunpack.i.h.bf16 %v2261_v55  ;;  %v870_v17 = vrot.slane %v750_v30, 4  ;;  %v1248_v24 = vunpack.i.l.bf16 %v2261_v55 }
 0x293   :  { %v1234_v21 = vunpack.i.h.bf16 %v1232_v20  ;;  %v1233_v32 = vunpack.i.l.bf16 %v1232_v20  ;;  %v731_v47 = vpack.c.bf16 %v727_v25, %v727_v25  ;;  %v732_v2 = vpack.c.bf16 %v728_v51, %v728_v51 }
 0x294   :  { %v2273_v8 = vrot.slane %v729_v46, 6  ;;  %v2275_v42 = vpop.permute.xlu0 %1256  ;;  %v1242_v48 = vpop.permute.xlu1 %1241  ;;  %v910_v7 = vsel %vm2692_vm4, %v710_v57, %v862_v52  ;;  %vm2693_vm14 = vcmp.lt.s32.totalorder %v1663_v13, 1  ;;  %vm2694_vm2 = vcmp.lt.s32.totalorder %v1663_v13, 15 }
 0x295   :  { %v763_v11 = vsel %vm2693_vm14, %v1248_v24, %v1249_v40  ;;  %v744_v49 = vsel %vm2694_vm2, %v1234_v21, %v1228_v16  ;;  %vm2695_vm8 = vmmov %vm2694_vm2  ;;  %vm2697_vm13 = vnez %v2549_v36  ;;  %vm2698_vm7 = vnez %v2551_v41 }
 0x296   :  { %v741_v37 = vsel %vm2695_vm8, %v1233_v32, %v1234_v21  ;;  %vm2696_vm11 = vmmov %vm2694_vm2  ;;  %v745_v29 = vsel %vm2697_vm13, %v744_v49, 0.0  ;;  %vm2699_vm4 = vnez %v2561_v63  ;;  %v1259_v45 = vunpack.i.h.bf16 %v2275_v42 }
 0x297   :  { %v742_v61 = vsel %vm2696_vm11, %v1229_v53, %v1233_v32  ;;  %v748_v30 = vsel %vm2699_vm4, %v741_v37, 0.0  ;;  %v749_v38 = vpack.c.bf16 %v745_v29, %v745_v29  ;;  %v1258_v5 = vunpack.i.l.bf16 %v2275_v42 }
 0x298   :  { %v747_v18 = vsel %vm2698_vm7, %v742_v61, 0.0  ;;  %v752_v16 = vpack.c.bf16 %v748_v30, %v748_v30  ;;  %v2294_v27 = vrot.slane %v731_v47, 6  ;;  %v2296_v55 = vrot.slane %v732_v2, 6  ;;  %v2298_v20 = vpop.permute.xlu0 %1266  ;;  %v1252_v41 = vpop.permute.xlu1 %1251 }
 0x299   :  { %v751_v60 = vpack.c.bf16 %v747_v18, %v747_v18  ;;  %v1244_v53 = vunpack.i.h.bf16 %v1242_v48  ;;  %v1243_v36 = vunpack.i.l.bf16 %v1242_v48  ;;  %v2300_v57 = vrot.slane %v749_v38, 4 }
 0x29a   :  { %vm2700_vm14 = vcmp.lt.s32.totalorder %v1663_v13, 127  ;;  %vm2701_vm2 = vnez %v2587_v19  ;;  %vm2702_vm8 = vcmask 1043456   ;;  %vm2703_vm11 = vnez %v2577_v62  ;;  %v2707_v19 = vld [vmem:[#allocation22_spill] sm:$0xff] }
 0x29b   :  { %v787_v63 = vsel %vm2700_vm14, %v1258_v5, %v1259_v45  ;;  %v766_v6 = vsel %vm2701_vm2, %v763_v11, 0.0  ;;  %v920_v25 = vsel %vm2702_vm8, %v910_v7, %v870_v17  ;;  %vm2704_vm13 = vcmp.lt.s32.totalorder %v1663_v13, 17  ;;  %v2709_v17 = vld [vmem:[#allocation21_spill] sm:$0xff]  ;;  %v2711_v7 = vld [vmem:[#allocation20_spill] sm:$0xff] }
 0x29c   :  { %v789_v51 = vsel %vm2703_vm11, %v787_v63, 0.0  ;;  %v704_v52 = vsel %vm2704_vm13, %v1244_v53, %v1238_v15  ;;  %vm2705_vm7 = vmmov %vm2704_vm13  ;;  %v2317_v32 = vrot.slane %v751_v60, 4  ;;  %v2319_v47 = vrot.slane %v752_v16, 4  ;;  %v2336_v49 = vpop.permute.xlu0 %1276  ;;  %v1262_v37 = vpop.permute.xlu1 %1261 }
 0x29d   :  { %v701_v46 = vsel %vm2705_vm7, %v1243_v36, %v1244_v53  ;;  %vm2706_vm4 = vmmov %vm2705_vm7  ;;  %vm2708_vm14 = vnez %v2707_v19  ;;  %vm2710_vm2 = vnez %v2709_v17  ;;  %v793_v48 = vpack.c.bf16 %v789_v51, %v789_v51 }
 0x29e   :  { %v702_v21 = vsel %vm2706_vm4, %v1239_v39, %v1243_v36  ;;  %v2323_v2 = vsel %vm2708_vm14, %v704_v52, 0.0  ;;  %vm2712_vm8 = vnez %v2711_v7  ;;  %v1269_v39 = vunpack.i.h.bf16 %v2298_v20 }
 0x29f   :  { %v2327_v62 = vsel %vm2710_vm2, %v702_v21, 0.0  ;;  %v709_v15 = vpack.c.bf16 %v2323_v2, %v2323_v2  ;;  %v2333_v11 = vsel %vm2712_vm8, %v701_v46, 0.0  ;;  %v1268_v29 = vunpack.i.l.bf16 %v2298_v20 }
 0x2a0   :  { %v711_v61 = vpack.c.bf16 %v2327_v62, %v2327_v62  ;;  %v1254_v18 = vunpack.i.h.bf16 %v1252_v41  ;;  %v1253_v30 = vunpack.i.l.bf16 %v1252_v41  ;;  %v770_v38 = vpack.c.bf16 %v766_v6, %v766_v6  ;;  %v2357_v21 = vpop.permute.xlu0 %1286  ;;  %v1272_v19 = vpop.permute.xlu1 %1271 }
 0x2a1   :  { %v1279_v60 = vunpack.i.h.bf16 %v2336_v49  ;;  %v1278_v16 = vunpack.i.l.bf16 %v2336_v49  ;;  %v1264_v53 = vunpack.i.h.bf16 %v1262_v37  ;;  %v712_v36 = vpack.c.bf16 %v2333_v11, %v2333_v11 }
 0x2a2   :  { %vm2713_vm11 = vcmp.lt.s32.totalorder %v1663_v13, 113  ;;  %vm2714_vm13 = vcmp.lt.s32.totalorder %v1663_v13, 1  ;;  %vm2716_vm4 = vnez %v2593_v9  ;;  %vm2717_vm14 = vnez %v2606_v0 }
 0x2a3   :  { %v807_v63 = vsel %vm2713_vm11, %v1268_v29, %v1269_v39  ;;  %v764_v51 = vsel %vm2714_vm13, %v1254_v18, %v1248_v24  ;;  %vm2715_vm7 = vmmov %vm2714_vm13  ;;  %vm2718_vm2 = vnez %v2611_v50  ;;  %v878_v46 = vrot.slane %v770_v38, 2 }
 0x2a4   :  { %v762_v20 = vsel %vm2715_vm7, %v1249_v40, %v1253_v30  ;;  %v809_v41 = vsel %vm2716_vm4, %v807_v63, 0.0  ;;  %v765_v6 = vsel %vm2717_vm14, %v764_v51, 0.0  ;;  %v2359_v2 = vrot.slane %v793_v48, 6  ;;  %vm2719_vm8 = vmmov %vm2715_vm7 }
 0x2a5   :  { %v767_v52 = vsel %vm2718_vm2, %v762_v20, 0.0  ;;  %v813_v17 = vpack.c.bf16 %v809_v41, %v809_v41  ;;  %v761_v24 = vsel %vm2719_vm8, %v1253_v30, %v1254_v18  ;;  %vm2720_vm11 = vcmp.lt.s32.totalorder %v1663_v13, 112  ;;  %v2723_v18 = vld [vmem:[#allocation25_spill] sm:$0xff]  ;;  %v2729_v20 = vld [vmem:[#allocation23_spill] sm:$0xff] }
 0x2a6   :  { %v827_v9 = vsel %vm2720_vm11, %v1278_v16, %v1279_v60  ;;  %v769_v0 = vpack.c.bf16 %v765_v6, %v765_v6  ;;  %vm2721_vm13 = vcmask 1045504   ;;  %vm2722_vm7 = vcmp.lt.s32.totalorder %v1663_v13, 127 }
 0x2a7   :  { %v929_v50 = vsel %vm2721_vm13, %v920_v25, %v878_v46  ;;  %v788_v40 = vsel %vm2722_vm7, %v1264_v53, %v1258_v5  ;;  %v1263_v7 = vunpack.i.l.bf16 %v1262_v37  ;;  %v771_v48 = vpack.c.bf16 %v767_v52, %v767_v52  ;;  %vm2725_vm14 = vmmov %vm2722_vm7  ;;  %v2727_v37 = vld [vmem:[#allocation24_spill] sm:$0xff]  ;;  %v1282_v46 = vpop.permute.xlu1 %1281 }
 0x2a8   :  { %991 = vmatprep.subr.bf16.mxu0 %v929_v50  ;;  %v2374_v11 = vsel %vm2084_vm12, %v827_v9, 0.0  ;;  %vm2724_vm4 = vnez %v2723_v18  ;;  %v1289_v38 = vunpack.i.h.bf16 %v2357_v21  ;;  %vm2726_vm2 = vmmov %vm2722_vm7  ;;  %v1288_v25 = vunpack.i.l.bf16 %v2357_v21 }
 0x2a9   :  { %v792_v30 = vsel %vm2724_vm4, %v788_v40, 0.0  ;;  %v785_v51 = vsel %vm2725_vm14, %v1263_v7, %v1264_v53  ;;  %v786_v5 = vsel %vm2726_vm2, %v1259_v45, %v1263_v7  ;;  %vm2728_vm8 = vnez %v2727_v37 }
 0x2aa   :  { %v796_v63 = vpack.c.bf16 %v792_v30, %v792_v30  ;;  %v790_v14 = vsel %vm2728_vm8, %v786_v5, 0.0  ;;  %vm2730_vm12 = vnez %v2729_v20  ;;  %v1274_v6 = vunpack.i.h.bf16 %v1272_v19 }
 0x2ab   :  { %v791_v41 = vsel %vm2730_vm12, %v785_v51, 0.0  ;;  %v1273_v52 = vunpack.i.l.bf16 %v1272_v19  ;;  %v2390_v9 = vrot.slane %v813_v17, 4  ;;  %v833_v53 = vpack.c.bf16 %v2374_v11, %v2374_v11  ;;  %v2737_v51 = vld [vmem:[#allocation26_spill] sm:$0xff] }
 0x2ac   :  { %v794_v42 = vpack.c.bf16 %v790_v14, %v790_v14  ;;  %v795_v50 = vpack.c.bf16 %v791_v41, %v791_v41  ;;  %vm2731_vm11 = vcmp.lt.s32.totalorder %v1663_v13, 113  ;;  %v877_v7 = vrot.slane %v769_v0, 2  ;;  %v2741_v14 = vld [vmem:[#allocation27_spill] sm:$0xff] }
 0x2ad   :  { %v808_v45 = vsel %vm2731_vm11, %v1274_v6, %v1268_v29  ;;  %vm2732_vm13 = vmmov %vm2731_vm11  ;;  %v888_v18 = vrot.slane %v796_v63, 6  ;;  %vm2734_vm4 = vcmp.lt.s32.totalorder %v1663_v13, 111  ;;  %vm2735_vm14 = vnez %v2597_v43 }
 0x2ae   :  { %v805_v21 = vsel %vm2732_vm13, %v1273_v52, %v1274_v6  ;;  %vm2733_vm7 = vmmov %vm2731_vm11  ;;  %v847_v19 = vsel %vm2734_vm4, %v1288_v25, %v1289_v38  ;;  %v812_v17 = vsel %vm2735_vm14, %v808_v45, 0.0  ;;  %vm2736_vm2 = vnez %v2595_v33 }
 0x2af   :  { %v806_v40 = vsel %vm2733_vm7, %v1269_v39, %v1273_v52  ;;  %v816_v30 = vpack.c.bf16 %v812_v17, %v812_v17  ;;  %vm2738_vm8 = vnez %v2737_v51  ;;  %vm2739_vm12 = vcmask 1041408   ;;  %v1292_v52 = vpop.permute.xlu1 %1291 }
 0x2b0   :  { %v810_v11 = vsel %vm2736_vm2, %v806_v40, 0.0  ;;  %v811_v29 = vsel %vm2738_vm8, %v805_v21, 0.0  ;;  %v907_v37 = vsel %vm2739_vm12, %v709_v15, %v2273_v8  ;;  %v886_v39 = vrot.slane %v794_v42, 6  ;;  %vm2744_vm4 = vmmov %vm2739_vm12 }
 0x2b1   :  { %v814_v5 = vpack.c.bf16 %v810_v11, %v810_v11  ;;  %v887_v0 = vrot.slane %v795_v50, 6  ;;  %vm2740_vm11 = vcmask 1043456   ;;  %vm2742_vm13 = vnez %v2741_v14  ;;  %vm2745_vm14 = vmmov %vm2744_vm4  ;;  %v974_v54 = vpop.permute.xlu0 %973 }
 0x2b2   :  { %v918_v63 = vsel %vm2740_vm11, %v907_v37, %v2300_v57  ;;  %v768_v43 = vsel %vm2742_vm13, %v761_v24, 0.0  ;;  %v815_v20 = vpack.c.bf16 %v811_v29, %v811_v29  ;;  %vm2743_vm7 = vcmask 1045504   ;;  %vm2746_vm2 = vmmov %vm2740_vm11 }
 0x2b3   :  { %v926_v33 = vsel %vm2743_vm7, %v918_v63, %v877_v7  ;;  %v772_v41 = vpack.c.bf16 %v768_v43, %v768_v43  ;;  %v916_v6 = vsel %vm2744_vm4, %v712_v36, %v2296_v55  ;;  %v896_v45 = vrot.slane %v816_v30, 4  ;;  %vm2747_vm8 = vmmov %vm2746_vm2 }
 0x2b4   :  { %v894_v21 = vrot.slane %v814_v5, 4  ;;  %992 = vmatpush1.bf16.msra.mxu0 %v926_v33  ;;  %v879_v8 = vrot.slane %v771_v48, 2  ;;  %v913_v57 = vsel %vm2745_vm14, %v711_v61, %v2294_v27  ;;  %v1284_v42 = vunpack.i.h.bf16 %v1282_v46  ;;  %vm2748_vm12 = vmmov %vm2743_vm7 }
 0x2b5   :  { %v880_v15 = vrot.slane %v772_v41, 2  ;;  %v922_v24 = vsel %vm2746_vm2, %v913_v57, %v2317_v32  ;;  %v1283_v50 = vunpack.i.l.bf16 %v1282_v46  ;;  %v924_v55 = vsel %vm2747_vm8, %v916_v6, %v2319_v47  ;;  %vm2749_vm11 = vmmov %vm2743_vm7  ;;  %v1297_v6 = vld [vmem:[#allocation2] sm:$0xff] }
 0x2b6   :  { %v932_v36 = vsel %vm2748_vm12, %v922_v24, %v879_v8  ;;  %v1294_v40 = vunpack.i.h.bf16 %v1292_v52  ;;  %v1293_v7 = vunpack.i.l.bf16 %v1292_v52  ;;  %v895_v48 = vrot.slane %v815_v20, 4 }
 0x2b7   :  { %v935_v17 = vsel %vm2749_vm11, %v924_v55, %v880_v15  ;;  %vm2750_vm13 = vcmp.lt.s32.totalorder %v1663_v13, 112  ;;  %vm2753_vm14 = vcmp.lt.s32.totalorder %v1663_v13, 111  ;;  %vm2756_vm8 = vcmask 1041408  }
 0x2b8   :  { %v825_v62 = vsel %vm2750_vm13, %v1283_v50, %v1284_v42  ;;  %vm2751_vm7 = vmmov %vm2750_vm13  ;;  %1032 = vmatprep.subr.bf16.mxu1 %v935_v17  ;;  %v848_v61 = vsel %vm2753_vm14, %v1294_v40, %v1288_v25  ;;  %vm2757_vm12 = vcmask 1043456   ;;  %v901_v29 = vrot.slane %v833_v53, 2 }
 0x2b9   :  { %v826_v27 = vsel %vm2751_vm7, %v1279_v60, %v1283_v50  ;;  %vm2752_vm4 = vmmov %vm2751_vm7  ;;  %v831_v47 = vsel %vm2095_vm15, %v825_v62, 0.0  ;;  %1033 = vmatpush1.bf16.msra.mxu1 %v932_v36  ;;  %v852_v60 = vsel %vm2061_vm10, %v848_v61, 0.0  ;;  %v849_v53 = vsel %vm2122_vm0, %v847_v19, 0.0  ;;  %v969_v19 = vld [vmem:[#allocation7] sm:$0x3]  ;;  %v1298_v50 = vld [vmem:[#allocation2 + $0x8] sm:$0xff] }
 0x2ba   :  { %v828_v32 = vsel %vm2752_vm4, %v1284_v42, %v1278_v16  ;;  %vm2754_vm2 = vmmov %vm2753_vm14  ;;  %v835_v11 = vpack.c.bf16 %v831_v47, %v831_v47  ;;  %v830_v16 = vsel %vm2038_vm6, %v826_v27, 0.0  ;;  %v856_v30 = vpack.c.bf16 %v852_v60, %v852_v60 }
 0x2bb   :  { %v846_v46 = vsel %vm2754_vm2, %v1289_v38, %v1293_v7  ;;  %vm2755_vm15 = vmmov %vm2754_vm2  ;;  %v834_v51 = vpack.c.bf16 %v830_v16, %v830_v16  ;;  %v942_v38 = vsel %vm2756_vm8, %v774_v28, %v886_v39  ;;  %v832_v35 = vsel %vm2068_vm5, %v828_v32, 0.0 }
 0x2bc   :  { %v850_v49 = vsel %vm2054_vm1, %v846_v46, 0.0  ;;  %v845_v58 = vsel %vm2755_vm15, %v1293_v7, %v1294_v40  ;;  %v952_v44 = vsel %vm2757_vm12, %v942_v38, %v894_v21  ;;  %v836_v59 = vpack.c.bf16 %v832_v35, %v832_v35  ;;  %vm2758_vm1 = vmmov %vm2756_vm8 }
 0x2bd   :  { %v854_v25 = vpack.c.bf16 %v850_v49, %v850_v49  ;;  %v902_v5 = vrot.slane %v834_v51, 2  ;;  %v948_v13 = vsel %vm2758_vm1, %v776_v12, %v888_v18  ;;  %vm2759_vm6 = vmmov %vm2758_vm1  ;;  %v903_v37 = vrot.slane %v835_v11, 2 }
 0x2be   :  { %v939_v26 = vsel %vm2759_vm6, %v773_v23, %v2359_v2  ;;  %vm2760_vm10 = vmmov %vm2757_vm12  ;;  %v904_v12 = vrot.slane %v836_v59, 2  ;;  %v853_v39 = vpack.c.bf16 %v849_v53, %v849_v53  ;;  %v851_v22 = vsel %vm2129_vm3, %v845_v58, 0.0 }
 0x2bf   :  { %v956_v28 = vsel %vm2760_vm10, %v948_v13, %v896_v45  ;;  %vm2761_vm5 = vmmov %vm2758_vm1  ;;  %v961_v56 = vsel %vm2749_vm11, %v952_v44, %v902_v5 }
 0x2c0   :  { %v945_v31 = vsel %vm2761_vm5, %v775_v1, %v887_v0  ;;  %vm2762_vm13 = vmmov %vm2760_vm10  ;;  %993 = vmatprep.subr.bf16.mxu0 %v961_v56  ;;  %v855_v1 = vpack.c.bf16 %v851_v22, %v851_v22 }
 0x2c1   :  { %v950_v18 = vsel %vm2762_vm13, %v939_v26, %v2390_v9  ;;  %vm2763_vm7 = vmmov %vm2760_vm10 }
 0x2c2   :  { %v954_v10 = vsel %vm2763_vm7, %v945_v31, %v895_v48  ;;  %vm2764_vm4 = vmmov %vm2749_vm11 }
 0x2c3   :  { %v958_v23 = vsel %vm2764_vm4, %v950_v18, %v901_v29  ;;  %vm2765_vm14 = vmmov %vm2764_vm4 }
 0x2c4   :  { %v964_v2 = vsel %vm2765_vm14, %v954_v10, %v903_v37  ;;  %vm2766_vm2 = vmmov %vm2764_vm4  ;;  %994 = vmatpush1.bf16.msra.mxu0 %v958_v23 }
 0x2c5   :  { %v967_v34 = vsel %vm2766_vm2, %v956_v28, %v904_v12  ;;  %vm2767_vm0 = vmmov %vm2758_vm1 }
 0x2c6   :  { %1034 = vmatprep.subr.bf16.mxu1 %v967_v34  ;;  %1113 = vmatprep.subr.msk.bf16.mxu0 %vm2767_vm0, %v854_v25  ;;  %vm2768_vm15 = vmmov %vm2767_vm0 }
 0x2c7   :  { %1035 = vmatpush1.bf16.msra.mxu1 %v964_v2  ;;  %vm2769_vm8 = vmmov %vm2767_vm0 }
 0x2c8   :  { %1115 = vmatprep.subr.msk.bf16.mxu1 %vm2768_vm15, %v856_v30  ;;  %v980_v9 = vsel %vm2769_vm8, %v853_v39, 0  ;;  %vm2770_vm12 = vmmov %vm2767_vm0 }
 0x2c9   :  { %996 = vmatpush1.bf16.msra.mxu0 %v980_v9  ;;  %v986_v0 = vsel %vm2770_vm12, %v855_v1, 0 }
 0x2cb   :  { %1037 = vmatpush1.bf16.msra.mxu1 %v986_v0 }
 0x2cc   :  { %1114 = vmatmul.mubr.msk.bf16.vlgmr.msra.gmra.mrb[4].mxu0 %vm591_vm9, %v969_v19 }
 0x2ce   :  { %1116 = vmatmul.mubr.msk.bf16.vlgmr.msra.gmra.mrb[4].mxu1 %vm591_vm9, %v969_v19 }
 0x39f   :  { %v1025_v63 = vpop.f32.mrb[4].mxu0 }
 0x3a0   :  { %v1026_v14 = vadd.f32 %v1025_v63, %v974_v54  ;;  %v1027_v43 = vpop.f32.mrb[5].mxu0 }
 0x3a1   :  { %v1066_v20 = vpop.f32.mrb[4].mxu1  ;;  %v1028_v33 = vadd.f32 %v1027_v43, %v974_v54  ;;  %v1029_v41 = vpop.f32.mrb[6].mxu0 }
 0x3a2   :  { %v1073_v52 = vadd.f32 %v1297_v6, %v1026_v14  ;;  %v1067_v45 = vadd.f32 %v1066_v20, %v974_v54  ;;  %v1068_v21 = vpop.f32.mrb[5].mxu1  ;;  %v1030_v8 = vpop.f32.mrb[7].mxu0 }
 0x3a3   :  { %v1074_v57 = vadd.f32 %v1028_v33, %v1635_v3  ;;  %v1069_v15 = vadd.f32 %v1068_v21, %v974_v54  ;;  %v1070_v24 = vpop.f32.mrb[6].mxu1 }
 0x3a4   :  { %v1077_v42 = vmax.f32 %v1073_v52, 0.0  ;;  %v1075_v55 = vadd.f32 %v1298_v50, %v1067_v45  ;;  %v1071_v36 = vpop.f32.mrb[7].mxu1 }
 0x3a5   :  { %v1078_v40 = vmax.f32 %v1074_v57, 0.0  ;;  %v1076_v7 = vadd.f32 %v1069_v15, %v1639_v4 }
 0x3a6   :  { %v1079_v48 = vmax.f32 %v1075_v55, 0.0 }
 0x3a7   :  { %v1085_v17 = vcombine.low %v1077_v42, %v1078_v40  ;;  %v1080_v62 = vmax.f32 %v1076_v7, 0.0 }
 0x3a9   :  { %1089 = vst [vmem:[#allocation14] sm:$0xff] %v1085_v17  ;;  %v1086_v27 = vcombine.low %v1079_v48, %v1080_v62 }
 0x3ab   :  { %1090 = vst [vmem:[#allocation14 + $0x8] sm:$0xff] %v1086_v27 }
 0x3ac   :  { %1464 = shalt.err (!%p1461_p4)
}
 0x3ad   :  { %s1465_s16 = scalar_lea.hbm %s2511_s7, 256 }
 0x3ae   :  { %p1466_p5 = scmp.ne.s32.totalorder %s2511_s7, %s1465_s16  ;;  %p1469_p6 = scmp.lt.u32.totalorder %s1465_s16, %s2511_s7 }
 0x3b0   :  { %p1471_p7 = pnand %p1469_p6, %p1466_p5 }
 0x3b2   :  { %1474 = shalt.err (!%p1471_p7)
}
 0x3b3   :  { %1100 = dma.vmem_to_hbm [thread:$0]  %s1098_s27, 256, %s2511_s7, [#allocation4]  }
 0x3b4   :  { %1483 = dma.done.wait [#allocation4], 256  }
 0x3b5   :  { %1484 = vsyncadd [#allocation4], 4294967040 }
 0x3b6   :  { %1104 = vsyncpa [#allocation3], 1 }
 0x3b7   :  { %1105 = vsyncpa [#allocation6], 1 }
 0x3b8   :  { %1106 = vsyncpa [#allocation9], 1 }
 0x3b9   :  { %1107 = vsyncpa [#allocation12], 1 }
 0x3ba   :  { %1108 = vsyncpa [#allocation4], 1 }

</bundles_post_ra>
